<compile_context>
chip_gen: v6e
topology: v6e:2x2x1
jax: 0.10.0
libtpu: 0.0.40
codegen_flags: <defaults>
</compile_context>

<pallas_src>
import functools

import jax
import jax.numpy as jnp
import numpy as np
from jax import lax
from jax.experimental import pallas as pl
from jax.experimental.pallas import tpu as pltpu

BN_EPS = 1e-5


# --------------------------------------------------------------------------- #
# Small helpers
# --------------------------------------------------------------------------- #
def _round_up(x, m):
    return -(-x // m) * m


def _pick_band(rows, width, target_rows=512):
    """Smallest divisor of `rows` whose band gives matmul M = band*width >= target."""
    for d in range(1, rows + 1):
        if rows % d == 0 and d * width >= target_rows:
            return d
    return rows


def _for_each_band(n_bands, band, body):
    """Run body(row_offset) once per uniform row band.

    A single band is inlined statically; otherwise a rolled in-kernel loop
    (pl.loop -> scf.for) keeps code size and live ranges bounded instead of
    statically unrolling the band loop.
    """
    if n_bands == 1:
        body(0)
    else:
        pl.loop(0, n_bands)(lambda i: body(i * band))


def _vmem_limit_bytes(*, H, W, Cin, Ho, Wo, Cout, hidden, band_in, band_out):
    """Actual VMEM footprint (tiling-padded) + headroom, floored at the 32 MiB
    default and capped at 64 MiB (never blanket-request all of v7x's VMEM)."""
    lane, f32 = 128, 4
    scratch = (H + 2) * _round_up(W + 2, 8) * _round_up(hidden, lane) * f32
    x_blk = 2 * H * _round_up(W, 8) * _round_up(Cin, lane) * f32      # dbl buf
    o_blk = 2 * Ho * _round_up(Wo, 8) * _round_up(Cout, lane) * f32   # dbl buf
    weights = 2 * f32 * (
        _round_up(Cin, 8) * _round_up(hidden, lane)
        + 3 * 8 * _round_up(hidden, lane)              # (3,3,hidden) depthwise
        + 2 * 8 * _round_up(hidden, lane)              # b1, b2
        + _round_up(hidden, 8) * _round_up(Cout, lane)
        + 8 * _round_up(Cout, lane))                   # b3
    temps = f32 * (4 * band_in * W * _round_up(hidden, lane)
                   + 4 * band_out * Wo * _round_up(hidden, lane))
    need = scratch + x_blk + o_blk + weights + temps
    return int(min(max(need + (8 << 20), 32 << 20), 64 << 20))


# --------------------------------------------------------------------------- #
# Fused kernel: one grid step == one image.  Expanded hidden activation stays
# resident in VMEM scratch with a 1-pixel zero halo.
# --------------------------------------------------------------------------- #
def _fused_kernel(*refs, stride, use_res, has_expand, band_in, band_out,
                  mxu_dtype):
    if has_expand:
        (x_ref, we_ref, b1_ref, wd_ref, b2_ref, wp_ref, b3_ref,
         o_ref, hid_ref) = refs
    else:
        (x_ref, wd_ref, b2_ref, wp_ref, b3_ref, o_ref, hid_ref) = refs
        we_ref = b1_ref = None

    H, W, Cin = x_ref.shape
    Ho, Wo, Cout = o_ref.shape
    Hp, Wp, C = hid_ref.shape                       # (H + 2, W + 2, hidden)

    # ---- Hoisted, loop-invariant weight / bias loads (loaded once) ----------
    if has_expand:
        we = we_ref[...]                            # (Cin, C)   mxu_dtype
        b1 = b1_ref[...]                            # (1, C)     f32
    wd = wd_ref[...]                                # (3, 3, C)  f32, BN folded
    taps = [[wd[ky:ky + 1, kx:kx + 1, :] for kx in range(3)]
            for ky in range(3)]                     # 9 x (1,1,C), hoisted
    b2 = b2_ref[...]                                # (1, 1, C)  f32
    wp = wp_ref[...]                                # (C, Cout)  mxu_dtype
    b3 = b3_ref[...]                                # (1, Cout)  f32

    # ---- Halo init: zero border rows / cols of the VMEM-resident hidden.
    # Done every grid step (a few KB) instead of a program_id()==0 gate, which
    # would be wrong under megacore: each core has its own scratch and does
    # not start at program 0.
    zrow = jnp.zeros((1, Wp, C), hid_ref.dtype)
    hid_ref[0:1, :, :] = zrow
    hid_ref[Hp - 1:Hp, :, :] = zrow
    zcol = jnp.zeros((Hp, 1, C), hid_ref.dtype)
    hid_ref[:, 0:1, :] = zcol
    hid_ref[:, Wp - 1:Wp, :] = zcol

    # ---- Stage 1: 1x1 expand (MXU, bf16 operands / f32 acc) + BN + ReLU6 ----
    def expand_band(r0):
        xb = x_ref[pl.ds(r0, band_in), :, :]                 # (tb, W, Cin) f32
        if has_expand:
            xm = xb.reshape(band_in * W, Cin).astype(mxu_dtype)
            hb = jnp.dot(xm, we, preferred_element_type=jnp.float32)
            hb = jnp.clip(hb + b1, 0.0, 6.0)
            hb = hb.reshape(band_in, W, C)
        else:                                                # expand_ratio == 1
            hb = xb
        hid_ref[pl.ds(1 + r0, band_in), 1:W + 1, :] = hb.astype(hid_ref.dtype)

    _for_each_band(H // band_in, band_in, expand_band)

    # ---- Stages 2+3: 3x3 depthwise (VPU, f32) + 1x1 project (MXU) -----------
    def dw_proj_band(r0):
        acc = jnp.zeros((band_out, Wo, C), jnp.float32)
        for ky in range(3):
            for kx in range(3):
                if stride == 1:
                    win = hid_ref[pl.ds(r0 + ky, band_out), kx:kx + Wo, :]
                else:
                    # Strided output computed directly from the padded hidden.
                    win = hid_ref[pl.ds(stride * r0 + ky, band_out,
                                        stride=stride),
                                  pl.ds(kx, Wo, stride=stride), :]
                acc = acc + win * taps[ky][kx]
        hdw = jnp.clip(acc + b2, 0.0, 6.0)                   # (tb, Wo, C) f32

        yb = jnp.dot(hdw.reshape(band_out * Wo, C).astype(mxu_dtype), wp,
                     preferred_element_type=jnp.float32) + b3
        if use_res:          # stride == 1 and Cin == Cout  =>  W == Wo
            yb = yb + x_ref[pl.ds(r0, band_out), :, :].reshape(
                band_out * Wo, Cout)
        o_ref[pl.ds(r0, band_out), :, :] = (
            yb.reshape(band_out, Wo, Cout).astype(o_ref.dtype))

    _for_each_band(Ho // band_out, band_out, dw_proj_band)


# --------------------------------------------------------------------------- #
# BN folding (shared by kernel wrapper and reference so both see identical
# folded weights / biases).
# --------------------------------------------------------------------------- #
def _fold_bn(gamma, beta, mean, var, eps=BN_EPS):
    scale = gamma / jnp.sqrt(var + eps)
    bias = beta - mean * scale
    return scale, bias


def _fold_params(params, *, has_expand, hidden, oup, mxu_dtype):
    out = {}
    if has_expand:
        s1, b1 = _fold_bn(*params["bn1"])
        out["we"] = (params["w_expand"] * s1[None, :]).astype(mxu_dtype)
        out["b1"] = b1.reshape(1, hidden).astype(jnp.float32)
    s2, b2 = _fold_bn(*params["bn2"])
    out["wd"] = (params["w_dw"] * s2[None, None, :]).astype(jnp.float32)
    out["b2"] = b2.reshape(1, 1, hidden).astype(jnp.float32)
    s3, b3 = _fold_bn(*params["bn3"])
    out["wp"] = (params["w_proj"] * s3[None, :]).astype(mxu_dtype)
    out["b3"] = b3.reshape(1, oup).astype(jnp.float32)
    return out


# --------------------------------------------------------------------------- #
# Wrapper (public interface: NCHW in / NCHW out, like the PyTorch module)
# --------------------------------------------------------------------------- #
def inverted_residual_forward(x_nchw, params, *, stride, expand_ratio, inp,
                              oup, mxu_dtype=jnp.bfloat16,
                              matmul_rows_target=512):
    assert stride in (1, 2)
    use_res = (stride == 1) and (inp == oup)
    has_expand = (expand_ratio != 1)
    hidden = int(round(inp * expand_ratio))

    x = jnp.transpose(x_nchw, (0, 2, 3, 1)).astype(jnp.float32)   # NCHW -> NHWC
    N, H, W, _ = x.shape
    Ho = (H - 1) // stride + 1
    Wo = (W - 1) // stride + 1

    band_in = _pick_band(H, W, matmul_rows_target)
    band_out = _pick_band(Ho, Wo, matmul_rows_target)

    p = _fold_params(params, has_expand=has_expand, hidden=hidden, oup=oup,
                     mxu_dtype=mxu_dtype)

    args = [x]
    in_specs = [pl.BlockSpec((None, H, W, inp), lambda n: (n, 0, 0, 0))]
    if has_expand:
        args += [p["we"], p["b1"]]
        in_specs += [pl.BlockSpec((inp, hidden), lambda n: (0, 0)),
                     pl.BlockSpec((1, hidden), lambda n: (0, 0))]
    args += [p["wd"], p["b2"], p["wp"], p["b3"]]
    in_specs += [pl.BlockSpec((3, 3, hidden), lambda n: (0, 0, 0)),
                 pl.BlockSpec((1, 1, hidden), lambda n: (0, 0, 0)),
                 pl.BlockSpec((hidden, oup), lambda n: (0, 0)),
                 pl.BlockSpec((1, oup), lambda n: (0, 0))]

    kernel = functools.partial(_fused_kernel, stride=stride, use_res=use_res,
                               has_expand=has_expand, band_in=band_in,
                               band_out=band_out, mxu_dtype=mxu_dtype)

    vmem_limit = _vmem_limit_bytes(H=H, W=W, Cin=inp, Ho=Ho, Wo=Wo, Cout=oup,
                                   hidden=hidden, band_in=band_in,
                                   band_out=band_out)

    y = pl.pallas_call(
        kernel,
        out_shape=jax.ShapeDtypeStruct((N, Ho, Wo, oup), jnp.float32),
        grid_spec=pltpu.PrefetchScalarGridSpec(
            num_scalar_prefetch=0,
            grid=(N,),
            in_specs=in_specs,
            out_specs=pl.BlockSpec((None, Ho, Wo, oup),
                                   lambda n: (n, 0, 0, 0)),
            scratch_shapes=[pltpu.VMEM((H + 2, W + 2, hidden), jnp.float32)],
        ),
        compiler_params=pltpu.CompilerParams(
            dimension_semantics=("parallel",),
            vmem_limit_bytes=vmem_limit,
        ),
    )(*args)

    return jnp.transpose(y, (0, 3, 1, 2))                    # NHWC -> NCHW


# --------------------------------------------------------------------------- #
# Pure-JAX reference (correctness check).  mxu_dtype=float32 is the exact
# f32 PyTorch-style math; mxu_dtype=bfloat16 mirrors the kernel's operand
# casts so the mixed-precision path can be checked tightly as well.
# --------------------------------------------------------------------------- #
def reference_forward(x_nchw, params, *, stride, expand_ratio, inp, oup,
                      mxu_dtype=jnp.float32):
    use_res = (stride == 1) and (inp == oup)
    has_expand = (expand_ratio != 1)
    hidden = int(round(inp * expand_ratio))
    p = _fold_params(params, has_expand=has_expand, hidden=hidden, oup=oup,
                     mxu_dtype=mxu_dtype)

    x = jnp.transpose(x_nchw, (0, 2, 3, 1)).astype(jnp.float32)
    h = x
    if has_expand:
        h = jnp.einsum("nhwc,cd->nhwd", h.astype(mxu_dtype), p["we"],
                       preferred_element_type=jnp.float32)
        h = jnp.clip(h + p["b1"].reshape(1, 1, 1, hidden), 0.0, 6.0)
    w_dw = p["wd"].reshape(3, 3, 1, hidden)
    h = lax.conv_general_dilated(
        h, w_dw, window_strides=(stride, stride), padding=[(1, 1), (1, 1)],
        dimension_numbers=("NHWC", "HWIO", "NHWC"), feature_group_count=hidden)
    h = jnp.clip(h + p["b2"].reshape(1, 1, 1, hidden), 0.0, 6.0)
    y = jnp.einsum("nhwc,cd->nhwd", h.astype(mxu_dtype), p["wp"],
                   preferred_element_type=jnp.float32)
    y = y + p["b3"].reshape(1, 1, 1, oup)
    if use_res:
        y = y + x
    return jnp.transpose(y, (0, 3, 1, 2))


# --------------------------------------------------------------------------- #
def make_params(key, inp, oup, expand_ratio):
    hidden = int(round(inp * expand_ratio))
    ks = jax.random.split(key, 6)

    def bn(k, c):
        kg, kb, km, kv = jax.random.split(k, 4)
        gamma = jax.random.uniform(kg, (c,), jnp.float32, 0.5, 1.5)
        beta = jax.random.normal(kb, (c,), jnp.float32) * 0.1
        mean = jax.random.normal(km, (c,), jnp.float32) * 0.1
        var = jax.random.uniform(kv, (c,), jnp.float32, 0.5, 1.5)
        return gamma, beta, mean, var

    return {
        "w_expand": jax.random.normal(ks[0], (inp, hidden), jnp.float32) * 0.1,
        "bn1": bn(ks[1], hidden),
        "w_dw": jax.random.normal(ks[2], (3, 3, hidden), jnp.float32) * 0.1,
        "bn2": bn(ks[3], hidden),
        "w_proj": jax.random.normal(ks[4], (hidden, oup), jnp.float32) * 0.1,
        "bn3": bn(ks[5], oup),
    }


if __name__ == "__main__":
    key = jax.random.PRNGKey(0)
    configs = [
        # residual path (stride=1, inp==oup, expand_ratio=4)
        dict(N=2, inp=16, oup=16, H=16, W=16, stride=1, expand=4),
        # strided path (stride=2, no residual)
        dict(N=2, inp=16, oup=24, H=16, W=16, stride=2, expand=4),
        # no-expand path (expand_ratio=1)
        dict(N=2, inp=16, oup=24, H=16, W=16, stride=1, expand=1),
        # multi-band path (exercises the rolled pl.loop banding) + residual
        dict(N=1, inp=16, oup=16, H=32, W=32, stride=1, expand=6),
    ]
    for cfg in configs:
        kx_, kp_, key = jax.random.split(key, 3)
        x = jax.random.normal(kx_, (cfg["N"], cfg["inp"], cfg["H"], cfg["W"]),
                              jnp.float32)
        params = make_params(kp_, cfg["inp"], cfg["oup"], cfg["expand"])
        common = dict(stride=cfg["stride"], expand_ratio=cfg["expand"],
                      inp=cfg["inp"], oup=cfg["oup"])
        Ho = (cfg["H"] - 1) // cfg["stride"] + 1
        Wo = (cfg["W"] - 1) // cfg["stride"] + 1

        # f32 mode: exact f32 semantics; bf16 mode: matched mixed-precision ref.
        for mxu_dtype, tol in ((jnp.float32, 2e-3), (jnp.bfloat16, 1e-2)):
            out = jax.block_until_ready(inverted_residual_forward(
                x, params, mxu_dtype=mxu_dtype, **common))
            ref = jax.block_until_ready(reference_forward(
                x, params, mxu_dtype=mxu_dtype, **common))
            assert out.shape == (cfg["N"], cfg["oup"], Ho, Wo), out.shape
            np.testing.assert_allclose(np.asarray(out), np.asarray(ref),
                                       rtol=tol, atol=tol)
    print("KERNEL_OK")
</pallas_src>

<mosaic_0001>
module attributes {stable_mosaic.version = 11 : i64} {
  func.func @_fused_kernel(%arg0: i32, %arg1: memref<1x16x16x16xf32, #tpu.memory_space<vmem>>, %arg2: memref<16x64xf32, #tpu.memory_space<vmem>>, %arg3: memref<1x64xf32, #tpu.memory_space<vmem>>, %arg4: memref<3x3x64xf32, #tpu.memory_space<vmem>>, %arg5: memref<1x1x64xf32, #tpu.memory_space<vmem>>, %arg6: memref<64x16xf32, #tpu.memory_space<vmem>>, %arg7: memref<1x16xf32, #tpu.memory_space<vmem>>, %arg8: memref<1x16x16x16xf32, #tpu.memory_space<vmem>>, %arg9: memref<18x18x64xf32, #tpu.memory_space<vmem>>) attributes {dimension_semantics = [#tpu.dimension_semantics<parallel>], iteration_bounds = array<i64: 2>, scalar_prefetch = 0 : i64, scratch_operands = 1 : i64, tpu.core_type = #tpu.core_type<tc>, window_params = [{transform_indices = @transform_0, window_bounds = array<i64: 1, 16, 16, 16>}, {pipeline_mode = #tpu.pipeline_mode<synchronous>, transform_indices = @transform_1, window_bounds = array<i64: 16, 64>}, {pipeline_mode = #tpu.pipeline_mode<synchronous>, transform_indices = @transform_2, window_bounds = array<i64: 1, 64>}, {pipeline_mode = #tpu.pipeline_mode<synchronous>, transform_indices = @transform_3, window_bounds = array<i64: 3, 3, 64>}, {pipeline_mode = #tpu.pipeline_mode<synchronous>, transform_indices = @transform_4, window_bounds = array<i64: 1, 1, 64>}, {pipeline_mode = #tpu.pipeline_mode<synchronous>, transform_indices = @transform_5, window_bounds = array<i64: 64, 16>}, {pipeline_mode = #tpu.pipeline_mode<synchronous>, transform_indices = @transform_6, window_bounds = array<i64: 1, 16>}, {transform_indices = @transform_7, window_bounds = array<i64: 1, 16, 16, 16>}]} {
    %c0 = arith.constant 0 : index
    %c0_0 = arith.constant 0 : index
    %0 = vector.load %arg2[%c0, %c0_0] : memref<16x64xf32, #tpu.memory_space<vmem>>, vector<16x64xf32>
    %c0_1 = arith.constant 0 : index
    %c0_2 = arith.constant 0 : index
    %1 = vector.load %arg3[%c0_1, %c0_2] : memref<1x64xf32, #tpu.memory_space<vmem>>, vector<1x64xf32>
    %c0_3 = arith.constant 0 : index
    %c0_4 = arith.constant 0 : index
    %c0_5 = arith.constant 0 : index
    %2 = vector.load %arg4[%c0_3, %c0_4, %c0_5] : memref<3x3x64xf32, #tpu.memory_space<vmem>>, vector<3x3x64xf32>
    %3 = vector.extract_strided_slice %2 {offsets = [0, 0, 0], sizes = [1, 1, 64], strides = [1, 1, 1]} : vector<3x3x64xf32> to vector<1x1x64xf32>
    %4 = vector.extract_strided_slice %2 {offsets = [0, 1, 0], sizes = [1, 1, 64], strides = [1, 1, 1]} : vector<3x3x64xf32> to vector<1x1x64xf32>
    %5 = vector.extract_strided_slice %2 {offsets = [0, 2, 0], sizes = [1, 1, 64], strides = [1, 1, 1]} : vector<3x3x64xf32> to vector<1x1x64xf32>
    %6 = vector.extract_strided_slice %2 {offsets = [1, 0, 0], sizes = [1, 1, 64], strides = [1, 1, 1]} : vector<3x3x64xf32> to vector<1x1x64xf32>
    %7 = vector.extract_strided_slice %2 {offsets = [1, 1, 0], sizes = [1, 1, 64], strides = [1, 1, 1]} : vector<3x3x64xf32> to vector<1x1x64xf32>
    %8 = vector.extract_strided_slice %2 {offsets = [1, 2, 0], sizes = [1, 1, 64], strides = [1, 1, 1]} : vector<3x3x64xf32> to vector<1x1x64xf32>
    %9 = vector.extract_strided_slice %2 {offsets = [2, 0, 0], sizes = [1, 1, 64], strides = [1, 1, 1]} : vector<3x3x64xf32> to vector<1x1x64xf32>
    %10 = vector.extract_strided_slice %2 {offsets = [2, 1, 0], sizes = [1, 1, 64], strides = [1, 1, 1]} : vector<3x3x64xf32> to vector<1x1x64xf32>
    %11 = vector.extract_strided_slice %2 {offsets = [2, 2, 0], sizes = [1, 1, 64], strides = [1, 1, 1]} : vector<3x3x64xf32> to vector<1x1x64xf32>
    %c0_6 = arith.constant 0 : index
    %c0_7 = arith.constant 0 : index
    %c0_8 = arith.constant 0 : index
    %12 = vector.load %arg5[%c0_6, %c0_7, %c0_8] : memref<1x1x64xf32, #tpu.memory_space<vmem>>, vector<1x1x64xf32>
    %c0_9 = arith.constant 0 : index
    %c0_10 = arith.constant 0 : index
    %13 = vector.load %arg6[%c0_9, %c0_10] : memref<64x16xf32, #tpu.memory_space<vmem>>, vector<64x16xf32>
    %c0_11 = arith.constant 0 : index
    %c0_12 = arith.constant 0 : index
    %14 = vector.load %arg7[%c0_11, %c0_12] : memref<1x16xf32, #tpu.memory_space<vmem>>, vector<1x16xf32>
    %cst = arith.constant 0.000000e+00 : f32
    %15 = vector.broadcast %cst : f32 to vector<1x18x64xf32>
    %c0_13 = arith.constant 0 : index
    %c0_14 = arith.constant 0 : index
    %c0_15 = arith.constant 0 : index
    %16 = vector.load %arg9[%c0_13, %c0_14, %c0_15] : memref<18x18x64xf32, #tpu.memory_space<vmem>>, vector<1x18x64xf32>
    tpu.vector_store %arg9[%c0_13, %c0_14, %c0_15], %15 {strides = array<i32>} : memref<18x18x64xf32, #tpu.memory_space<vmem>>, vector<1x18x64xf32>,
    %c17 = arith.constant 17 : index
    %c0_16 = arith.constant 0 : index
    %c0_17 = arith.constant 0 : index
    %17 = vector.load %arg9[%c17, %c0_16, %c0_17] : memref<18x18x64xf32, #tpu.memory_space<vmem>>, vector<1x18x64xf32>
    tpu.vector_store %arg9[%c17, %c0_16, %c0_17], %15 {strides = array<i32>} : memref<18x18x64xf32, #tpu.memory_space<vmem>>, vector<1x18x64xf32>,
    %cst_18 = arith.constant 0.000000e+00 : f32
    %18 = vector.broadcast %cst_18 : f32 to vector<18x1x64xf32>
    %c0_19 = arith.constant 0 : index
    %c0_20 = arith.constant 0 : index
    %c0_21 = arith.constant 0 : index
    %19 = vector.load %arg9[%c0_19, %c0_20, %c0_21] : memref<18x18x64xf32, #tpu.memory_space<vmem>>, vector<18x1x64xf32>
    tpu.vector_store %arg9[%c0_19, %c0_20, %c0_21], %18 {strides = array<i32>} : memref<18x18x64xf32, #tpu.memory_space<vmem>>, vector<18x1x64xf32>,
    %c0_22 = arith.constant 0 : index
    %c17_23 = arith.constant 17 : index
    %c0_24 = arith.constant 0 : index
    %20 = vector.load %arg9[%c0_22, %c17_23, %c0_24] : memref<18x18x64xf32, #tpu.memory_space<vmem>>, vector<18x1x64xf32>
    tpu.vector_store %arg9[%c0_22, %c17_23, %c0_24], %18 {strides = array<i32>} : memref<18x18x64xf32, #tpu.memory_space<vmem>>, vector<18x1x64xf32>,
    %c0_25 = arith.constant 0 : index
    %c0_26 = arith.constant 0 : index
    %c0_27 = arith.constant 0 : index
    %c0_28 = arith.constant 0 : index
    %21 = vector.load %arg1[%c0_25, %c0_26, %c0_27, %c0_28] : memref<1x16x16x16xf32, #tpu.memory_space<vmem>>, vector<1x16x16x16xf32>
    %22 = vector.shape_cast %21 : vector<1x16x16x16xf32> to vector<16x16x16xf32>
    %23 = vector.shape_cast %22 : vector<16x16x16xf32> to vector<256x16xf32>
    %cst_29 = arith.constant dense<0.000000e+00> : vector<256x64xf32>
    %24 = tpu.matmul %23, %0, %cst_29 {dimension_numbers = #tpu.dot_dimension_numbers<[1], [0], [0], [1], [0, 0, 1, 1], [], []>} : vector<256x16xf32>, vector<16x64xf32>, vector<256x64xf32> -> vector<256x64xf32>
    %25 = vector.broadcast %1 : vector<1x64xf32> to vector<256x64xf32>
    %26 = arith.addf %24, %25 : vector<256x64xf32>
    %cst_30 = arith.constant 0.000000e+00 : f32
    %cst_31 = arith.constant 6.000000e+00 : f32
    %27 = vector.broadcast %cst_30 : f32 to vector<256x64xf32>
    %28 = arith.maximumf %27, %26 : vector<256x64xf32>
    %29 = vector.broadcast %cst_31 : f32 to vector<256x64xf32>
    %30 = arith.minimumf %29, %28 : vector<256x64xf32>
    %31 = vector.shape_cast %30 : vector<256x64xf32> to vector<16x16x64xf32>
    %c1 = arith.constant 1 : index
    %c1_32 = arith.constant 1 : index
    %c0_33 = arith.constant 0 : index
    %32 = vector.load %arg9[%c1, %c1_32, %c0_33] : memref<18x18x64xf32, #tpu.memory_space<vmem>>, vector<16x16x64xf32>
    tpu.vector_store %arg9[%c1, %c1_32, %c0_33], %31 {strides = array<i32>} : memref<18x18x64xf32, #tpu.memory_space<vmem>>, vector<16x16x64xf32>,
    %cst_34 = arith.constant 0.000000e+00 : f32
    %33 = vector.broadcast %cst_34 : f32 to vector<16x16x64xf32>
    %c0_35 = arith.constant 0 : index
    %c0_36 = arith.constant 0 : index
    %c0_37 = arith.constant 0 : index
    %34 = vector.load %arg9[%c0_35, %c0_36, %c0_37] : memref<18x18x64xf32, #tpu.memory_space<vmem>>, vector<16x16x64xf32>
    %35 = vector.broadcast %3 : vector<1x1x64xf32> to vector<16x16x64xf32>
    %36 = arith.mulf %34, %35 : vector<16x16x64xf32>
    %37 = arith.addf %33, %36 : vector<16x16x64xf32>
    %c0_38 = arith.constant 0 : index
    %c1_39 = arith.constant 1 : index
    %c0_40 = arith.constant 0 : index
    %38 = vector.load %arg9[%c0_38, %c1_39, %c0_40] : memref<18x18x64xf32, #tpu.memory_space<vmem>>, vector<16x16x64xf32>
    %39 = vector.broadcast %4 : vector<1x1x64xf32> to vector<16x16x64xf32>
    %40 = arith.mulf %38, %39 : vector<16x16x64xf32>
    %41 = arith.addf %37, %40 : vector<16x16x64xf32>
    %c0_41 = arith.constant 0 : index
    %c2 = arith.constant 2 : index
    %c0_42 = arith.constant 0 : index
    %42 = vector.load %arg9[%c0_41, %c2, %c0_42] : memref<18x18x64xf32, #tpu.memory_space<vmem>>, vector<16x16x64xf32>
    %43 = vector.broadcast %5 : vector<1x1x64xf32> to vector<16x16x64xf32>
    %44 = arith.mulf %42, %43 : vector<16x16x64xf32>
    %45 = arith.addf %41, %44 : vector<16x16x64xf32>
    %c1_43 = arith.constant 1 : index
    %c0_44 = arith.constant 0 : index
    %c0_45 = arith.constant 0 : index
    %46 = vector.load %arg9[%c1_43, %c0_44, %c0_45] : memref<18x18x64xf32, #tpu.memory_space<vmem>>, vector<16x16x64xf32>
    %47 = vector.broadcast %6 : vector<1x1x64xf32> to vector<16x16x64xf32>
    %48 = arith.mulf %46, %47 : vector<16x16x64xf32>
    %49 = arith.addf %45, %48 : vector<16x16x64xf32>
    %c1_46 = arith.constant 1 : index
    %c1_47 = arith.constant 1 : index
    %c0_48 = arith.constant 0 : index
    %50 = vector.load %arg9[%c1_46, %c1_47, %c0_48] : memref<18x18x64xf32, #tpu.memory_space<vmem>>, vector<16x16x64xf32>
    %51 = vector.broadcast %7 : vector<1x1x64xf32> to vector<16x16x64xf32>
    %52 = arith.mulf %50, %51 : vector<16x16x64xf32>
    %53 = arith.addf %49, %52 : vector<16x16x64xf32>
    %c1_49 = arith.constant 1 : index
    %c2_50 = arith.constant 2 : index
    %c0_51 = arith.constant 0 : index
    %54 = vector.load %arg9[%c1_49, %c2_50, %c0_51] : memref<18x18x64xf32, #tpu.memory_space<vmem>>, vector<16x16x64xf32>
    %55 = vector.broadcast %8 : vector<1x1x64xf32> to vector<16x16x64xf32>
    %56 = arith.mulf %54, %55 : vector<16x16x64xf32>
    %57 = arith.addf %53, %56 : vector<16x16x64xf32>
    %c2_52 = arith.constant 2 : index
    %c0_53 = arith.constant 0 : index
    %c0_54 = arith.constant 0 : index
    %58 = vector.load %arg9[%c2_52, %c0_53, %c0_54] : memref<18x18x64xf32, #tpu.memory_space<vmem>>, vector<16x16x64xf32>
    %59 = vector.broadcast %9 : vector<1x1x64xf32> to vector<16x16x64xf32>
    %60 = arith.mulf %58, %59 : vector<16x16x64xf32>
    %61 = arith.addf %57, %60 : vector<16x16x64xf32>
    %c2_55 = arith.constant 2 : index
    %c1_56 = arith.constant 1 : index
    %c0_57 = arith.constant 0 : index
    %62 = vector.load %arg9[%c2_55, %c1_56, %c0_57] : memref<18x18x64xf32, #tpu.memory_space<vmem>>, vector<16x16x64xf32>
    %63 = vector.broadcast %10 : vector<1x1x64xf32> to vector<16x16x64xf32>
    %64 = arith.mulf %62, %63 : vector<16x16x64xf32>
    %65 = arith.addf %61, %64 : vector<16x16x64xf32>
    %c2_58 = arith.constant 2 : index
    %c2_59 = arith.constant 2 : index
    %c0_60 = arith.constant 0 : index
    %66 = vector.load %arg9[%c2_58, %c2_59, %c0_60] : memref<18x18x64xf32, #tpu.memory_space<vmem>>, vector<16x16x64xf32>
    %67 = vector.broadcast %11 : vector<1x1x64xf32> to vector<16x16x64xf32>
    %68 = arith.mulf %66, %67 : vector<16x16x64xf32>
    %69 = arith.addf %65, %68 : vector<16x16x64xf32>
    %70 = vector.broadcast %12 : vector<1x1x64xf32> to vector<16x16x64xf32>
    %71 = arith.addf %69, %70 : vector<16x16x64xf32>
    %cst_61 = arith.constant 0.000000e+00 : f32
    %cst_62 = arith.constant 6.000000e+00 : f32
    %72 = vector.broadcast %cst_61 : f32 to vector<16x16x64xf32>
    %73 = arith.maximumf %72, %71 : vector<16x16x64xf32>
    %74 = vector.broadcast %cst_62 : f32 to vector<16x16x64xf32>
    %75 = arith.minimumf %74, %73 : vector<16x16x64xf32>
    %76 = vector.shape_cast %75 : vector<16x16x64xf32> to vector<256x64xf32>
    %cst_63 = arith.constant dense<0.000000e+00> : vector<256x16xf32>
    %77 = tpu.matmul %76, %13, %cst_63 {dimension_numbers = #tpu.dot_dimension_numbers<[1], [0], [0], [1], [0, 0, 1, 1], [], []>} : vector<256x64xf32>, vector<64x16xf32>, vector<256x16xf32> -> vector<256x16xf32>
    %78 = vector.broadcast %14 : vector<1x16xf32> to vector<256x16xf32>
    %79 = arith.addf %77, %78 : vector<256x16xf32>
    %c0_64 = arith.constant 0 : index
    %c0_65 = arith.constant 0 : index
    %c0_66 = arith.constant 0 : index
    %c0_67 = arith.constant 0 : index
    %80 = vector.load %arg1[%c0_64, %c0_65, %c0_66, %c0_67] : memref<1x16x16x16xf32, #tpu.memory_space<vmem>>, vector<1x16x16x16xf32>
    %81 = vector.shape_cast %80 : vector<1x16x16x16xf32> to vector<16x16x16xf32>
    %82 = vector.shape_cast %81 : vector<16x16x16xf32> to vector<256x16xf32>
    %83 = arith.addf %79, %82 : vector<256x16xf32>
    %84 = vector.shape_cast %83 : vector<256x16xf32> to vector<16x16x16xf32>
    %c0_68 = arith.constant 0 : index
    %c0_69 = arith.constant 0 : index
    %c0_70 = arith.constant 0 : index
    %c0_71 = arith.constant 0 : index
    %85 = vector.load %arg8[%c0_68, %c0_69, %c0_70, %c0_71] : memref<1x16x16x16xf32, #tpu.memory_space<vmem>>, vector<1x16x16x16xf32>
    %86 = vector.shape_cast %85 : vector<1x16x16x16xf32> to vector<16x16x16xf32>
    %87 = vector.shape_cast %84 : vector<16x16x16xf32> to vector<1x16x16x16xf32>
    tpu.vector_store %arg8[%c0_68, %c0_69, %c0_70, %c0_71], %87 {strides = array<i32>} : memref<1x16x16x16xf32, #tpu.memory_space<vmem>>, vector<1x16x16x16xf32>,
    return
  }
  func.func @transform_0(%arg0: i32) -> (i32, i32, i32, i32) {
    %c0_i32 = arith.constant 0 : i32
    %c0_i32_0 = arith.constant 0 : i32
    %c0_i32_1 = arith.constant 0 : i32
    %c0_i32_2 = arith.constant 0 : i32
    return %arg0, %c0_i32, %c0_i32_0, %c0_i32_1 : i32, i32, i32, i32
  }
  func.func @transform_1(%arg0: i32) -> (i32, i32) {
    %c0_i32 = arith.constant 0 : i32
    %c0_i32_0 = arith.constant 0 : i32
    %c0_i32_1 = arith.constant 0 : i32
    return %c0_i32, %c0_i32_0 : i32, i32
  }
  func.func @transform_2(%arg0: i32) -> (i32, i32) {
    %c0_i32 = arith.constant 0 : i32
    %c0_i32_0 = arith.constant 0 : i32
    %c0_i32_1 = arith.constant 0 : i32
    return %c0_i32, %c0_i32_0 : i32, i32
  }
  func.func @transform_3(%arg0: i32) -> (i32, i32, i32) {
    %c0_i32 = arith.constant 0 : i32
    %c0_i32_0 = arith.constant 0 : i32
    %c0_i32_1 = arith.constant 0 : i32
    %c0_i32_2 = arith.constant 0 : i32
    return %c0_i32, %c0_i32_0, %c0_i32_1 : i32, i32, i32
  }
  func.func @transform_4(%arg0: i32) -> (i32, i32, i32) {
    %c0_i32 = arith.constant 0 : i32
    %c0_i32_0 = arith.constant 0 : i32
    %c0_i32_1 = arith.constant 0 : i32
    %c0_i32_2 = arith.constant 0 : i32
    return %c0_i32, %c0_i32_0, %c0_i32_1 : i32, i32, i32
  }
  func.func @transform_5(%arg0: i32) -> (i32, i32) {
    %c0_i32 = arith.constant 0 : i32
    %c0_i32_0 = arith.constant 0 : i32
    %c0_i32_1 = arith.constant 0 : i32
    return %c0_i32, %c0_i32_0 : i32, i32
  }
  func.func @transform_6(%arg0: i32) -> (i32, i32) {
    %c0_i32 = arith.constant 0 : i32
    %c0_i32_0 = arith.constant 0 : i32
    %c0_i32_1 = arith.constant 0 : i32
    return %c0_i32, %c0_i32_0 : i32, i32
  }
  func.func @transform_7(%arg0: i32) -> (i32, i32, i32, i32) {
    %c0_i32 = arith.constant 0 : i32
    %c0_i32_0 = arith.constant 0 : i32
    %c0_i32_1 = arith.constant 0 : i32
    %c0_i32_2 = arith.constant 0 : i32
    return %arg0, %c0_i32, %c0_i32_0, %c0_i32_1 : i32, i32, i32, i32
  }
}

</mosaic_0001>

<bundles_post_ra>
// kernel: tpu_custom_call.1
= control target key start
LH: loop header
LB: loop body
LE: loop exit
PB: predicated region body
PF: predicated region fallthrough
CT: control target
= control target key end

     0   :  { %12 = vsyncpa [#allocation4], 0  ;;  %s4064_s0 = inlined_call_operand.hbm [shape: f32[2,16,16,16], index: 0, kind: input, shape index: {}]   ;;  %s4065_s1 = inlined_call_operand.vmem [shape: f32[16,64], index: 1, kind: input, shape index: {}]   ;;  %s4066_s2 = inlined_call_operand.vmem [shape: f32[1,64], index: 2, kind: input, shape index: {}]   ;;  %s4067_s3 = inlined_call_operand.vmem [shape: f32[3,3,64], index: 3, kind: input, shape index: {}]   ;;  %s4068_s4 = inlined_call_operand.vmem [shape: f32[1,1,64], index: 4, kind: input, shape index: {}]   ;;  %s4069_s5 = inlined_call_operand.vmem [shape: f32[64,16], index: 5, kind: input, shape index: {}]   ;;  %s4070_s6 = inlined_call_operand.vmem [shape: f32[1,16], index: 6, kind: input, shape index: {}]   ;;  %s4071_s7 = inlined_call_operand.hbm [shape: f32[2,16,16,16], index: 7, kind: output, shape index: {}]  }
   0x1   :  { %14 = vsyncpa [#allocation4 + $0x1], 0 }
   0x2   :  { %15 = vsyncpa [#allocation5], 0 }
   0x3   :  { %17 = vsyncpa [#allocation5 + $0x1], 0  ;;  %s2811_s24 = smov 0   ;;  %s2813_s25 = smov 0  }
   0x4   :  { %s2815_s26 = smov 0   ;;  %s2817_s27 = smov 0  }
   0x5 LB: > { %s2832_s28 = sadd.s32 4294967295, %s2762_s27   ;;  %s2329_s29 = sadd.s32 4294967294, %s2762_s27   ;;  %s2762_s27 = sphi %s2817_s27, %s4086_s27   ;;  %s2758_s26 = sphi %s2815_s26, %s4085_s26   ;;  %s2754_s25 = sphi %s2813_s25, %s4084_s25   ;;  %s2750_s24 = sphi %s2811_s24, %s4083_s24  }
   0x6   : > { %s2836_s30 = sadd.s32 1, %s2762_s27   ;;  %s30_s8 = sadd.s32 1, %s2758_s26 }
   0x7   : > { %s27_s9 = ssub.s32 %s2762_s27, %s2836_s30  ;;  %p37_p0 = scmp.ne.s32.totalorder %s2758_s26, %s2754_s25 }
   0x8   : > { %p28_p1 = scmp.eq.s32.totalorder %s27_s9, 0  ;;  %p38_p2 = scmp.eq.s32.totalorder %s2762_s27, 0 }
   0x9   : > { %p43_p3 = scmp.ne.s32.totalorder %s2754_s25, %s2750_s24  ;;  %p44_p4 = scmp.eq.s32.totalorder %s2832_s28, 0 }
   0xa   : > { %s2848_s10 = scalar_select %p28_p1, %s2758_s26, %s30_s8  }
   0xb   : > { %p2850_p5 = por %p38_p2, %p37_p0  ;;  %p2854_p6 = por %p44_p4, %p43_p3 }
   0xc   : > { %p193_p7 = scmp.eq.s32.totalorder %s2832_s28, 1  ;;  %p199_p8 = scmp.eq.s32.totalorder %s2329_s29, 1 }
   0xd   : > { %s4075_s12 = scalar_select %p2854_p6, 1, 0 }
   0xe   : > { %p2630_p10 = scmp.lt.s32.totalorder %s2762_s27, 2  ;;  %p2861_p11 = por %p193_p7, %p37_p0 }
   0xf   : > { %p2865_p12 = por %p199_p8, %p43_p3  ;;  %s237_s15 = sand.u32 1, %s2758_s26  }
  0x10   : > { %s4076_s13 = scalar_select %p2861_p11, 1, 0 }
  0x11   : > { %s4077_s14 = scalar_select %p2865_p12, 1, 0 }
  0x12   : > { %s2410_s16 = sshll.u32 %s2762_s27, 12  ;;  %s2332_s17 = sshll.u32 %s237_s15, 8 }
  0x13   : > { %s2874_s20 = scalar_lea.hbm %s4064_s0, %s2410_s16  ;;  %s241_s21 = scalar_lea.vmem [#allocation3], %s2332_s17 }
  0x14   : > { %s248_s22 = sshll.u32 %s241_s21, 4  ;;  %p2878_p13 = pnand %p2630_p10, %p2850_p5  ;;  %s2882_s22 = int_to_ptr.vmem [resolvable:$true] %s248_s22 }
  0x15   : > { %s2884_s29 = scalar_lea.sflag [#allocation4], %s237_s15  ;;  %s2670_s8 = scalar_lea.hbm %s2874_s20, 4096 }
  0x16   : > { %p2671_p0 = scmp.ne.s32.totalorder %s2874_s20, %s2670_s8  ;;  %p2672_p1 = pneg %p2878_p13 }
  0x17   : > { %s2675_s17 = scalar_lea.hbm %s4064_s0, 8192  ;;  %p2676_p4 = scmp.lt.s32.totalorder %s2874_s20, %s4064_s0 }
  0x18   : > { %p2673_p2 = pnand %p2672_p1, %p2671_p0  ;;  %p2677_p5 = scmp.lt.s32.totalorder %s2675_s17, %s2670_s8 }
  0x1a   : > { %p2674_p3 = pneg %p2673_p2  ;;  %p2678_p7 = por %p2677_p5, %p2676_p4 }
  0x1c   : > { %p2679_p8 = pnand %p2678_p7, %p2674_p3 }
  0x1e   : > { %2682 = shalt.err (!%p2679_p8)
}
  0x1f   : > { %s2683_s15 = scalar_lea.vmem %s2882_s22, 4096  ;;  %s2764_s19 = smov [#allocation3]  }
  0x20   : > { %p2684_p10 = scmp.ne.s32.totalorder %s2882_s22, %s2683_s15  ;;  %s2688_s21 = sshll.u32 %s2764_s19, 4  ;;  %s2689_s21 = int_to_ptr.vmem [resolvable:$false] %s2688_s21 }
  0x21   : > { %s2690_s9 = scalar_lea.vmem %s2689_s21, 8192  ;;  %p2691_p2 = scmp.lt.s32.totalorder %s2882_s22, %s2689_s21 }
  0x22   : > { %p2686_p9 = pnand %p2684_p10, %p2672_p1  ;;  %p2692_p12 = scmp.lt.s32.totalorder %s2690_s9, %s2683_s15 }
  0x24   : > { %p2687_p0 = pneg %p2686_p9  ;;  %p2693_p11 = por %p2692_p12, %p2691_p2 }
  0x26   : > { %p2694_p6 = pnand %p2693_p11, %p2687_p0 }
  0x28   : > { %2697 = shalt.err (!%p2694_p6)
}
  0x29   : > { %s2765_s8 = smov 128   ;;  %s2766_s16 = smov 8  }
  0x2a   : > { %2625 = dma.hbm_to_vmem [thread:$0]  (!%p2878_p13), %s2874_s20, 4096, %s2882_s22, %s2884_s29, %s2765_s8, %s2765_s8, %s2766_s16  }
  0x2b   : > { %p2335_p9 = scmp.ge.s32.totalorder %s2762_s27, 1  ;;  %p256_p1 = scmp.lt.s32.totalorder %s2762_s27, 3 }
  0x2d   : > { %p257_p3 = pnand %p2335_p9, %p256_p1 }
  0x2e   : > { %s2908_s17 = sand.u32 (!%p257_p3), 1, %s2754_s25   ;;  %p4079_p6 = scmp.ne.s32.totalorder (!%p257_p3), %s4075_s12, 0 }
  0x2f   : > { %260 = sbr.rel (%p257_p3) target bundleno = 667 (0x29b), region = 48  ;;  %s2336_s11 = sshll.u32 (!%p257_p3), %s2908_s17, 8 }
  0x30   : > { %s263_s18 = scalar_lea.sflag (!%p257_p3), [#allocation4], %s2908_s17  ;;  %s2914_s15 = scalar_lea.vmem (!%p257_p3), [#allocation3], %s2336_s11 }
  0x34   : > { %2741 = dma.done.wait (%p4079_p6), %s263_s18, 4096  }
  0x35   : > { %2743 = vsyncadd (%p4079_p6), %s263_s18, 4294963200  ;;  %vm397_vm0 = vcmask 130048   ;;  %v298_v0 = vld [vmem:[%s4065_s1 + $0x8] sm:$0xff]  ;;  %v297_v1 = vld [vmem:[%s4065_s1] sm:$0xff]  ;;  %vm313_vm1 = vcmask 523264   ;;  %v2767_v34 = vmov 0.0   ;;  %v848_v43 = vlaneseq }
  0x36   : > { %v359_v2 = vld [vmem:[%s2914_s15] sm:$0xff]  ;;  %2486 = vmatprep.subr.mxu0 %v298_v0  ;;  %v360_v3 = vld [vmem:[%s2914_s15 + $0x8] sm:$0xff]  ;;  %v361_v4 = vld [vmem:[%s2914_s15 + $0x10] sm:$0xff]  ;;  %314 = vst.msk [vmem:[#allocation2] sm:$0xff] %vm313_vm1, %v2767_v34  ;;  %vm322_vm2 = vcmask 516096   ;;  %vm316_vm3 = vcmask 517120  }
  0x37   : > { %2490 = vmatprep.mubr.msk.f32.mxu0 %vm397_vm0, %v359_v2  ;;  %2487 = vmatpush3.msra.mxu0 %v298_v0  ;;  %v362_v5 = vld [vmem:[%s2914_s15 + $0x18] sm:$0xff]  ;;  %v363_v6 = vld [vmem:[%s2914_s15 + $0x20] sm:$0xff]  ;;  %v364_v7 = vld [vmem:[%s2914_s15 + $0x28] sm:$0xff]  ;;  %315 = vst.msk [vmem:[#allocation2 + $0x8] sm:$0xff] %vm313_vm1, %v2767_v34  ;;  %v849_v44 = vshrl.u32 %v848_v43, 7  ;;  %s3888_s22 = scalar_lea.vmem [#allocation6], %s2336_s11 }
  0x38   : > { %2488 = vmatprep.subr.mxu0 %v297_v1  ;;  %v365_v8 = vld [vmem:[%s2914_s15 + $0x30] sm:$0xff]  ;;  %v366_v9 = vld [vmem:[%s2914_s15 + $0x38] sm:$0xff]  ;;  %v367_v10 = vld [vmem:[%s2914_s15 + $0x40] sm:$0xff]  ;;  %319 = vst.msk [vmem:[#allocation2 + $0x198] sm:$0xff] %vm313_vm1, %v2767_v34  ;;  %s2411_s11 = sshll.u32 %s2832_s28, 12  ;;  %s2256_s23 = sshll.u32 %s3888_s22, 4  ;;  %s4017_s23 = int_to_ptr.vmem [resolvable:$true] %s2256_s23 }
  0x39   : > { %2489 = vmatpush3.msra.mxu0 %v297_v1  ;;  %v368_v11 = vld [vmem:[%s2914_s15 + $0x48] sm:$0xff]  ;;  %v369_v12 = vld [vmem:[%s2914_s15 + $0x50] sm:$0xff]  ;;  %v370_v13 = vld [vmem:[%s2914_s15 + $0x58] sm:$0xff]  ;;  %320 = vst.msk [vmem:[#allocation2 + $0x1a0] sm:$0xff] %vm313_vm1, %v2767_v34  ;;  %v3059_v46 = vsub.s32 0, %v849_v44  ;;  %v950_v47 = vsub.s32 1, %v849_v44  ;;  %s4015_s19 = scalar_lea.hbm %s4071_s7, %s2411_s11 }
  0x3a   : > { %2491 = vmatmul.mubr.msk.f32.vlgmr.msra.gmra.mxu0 %vm397_vm0, %v360_v3  ;;  %v371_v14 = vld [vmem:[%s2914_s15 + $0x60] sm:$0xff]  ;;  %v372_v15 = vld [vmem:[%s2914_s15 + $0x68] sm:$0xff]  ;;  %v373_v16 = vld [vmem:[%s2914_s15 + $0x70] sm:$0xff]  ;;  %323 = vst.msk [vmem:[#allocation2] sm:$0x1] %vm322_vm2, %v2767_v34  ;;  %v1050_v54 = vsub.s32 2, %v849_v44 }
  0x3b   : > { %2493 = vmatprep.mubr.msk.f32.mxu0 %vm397_vm0, %v361_v4  ;;  %v374_v17 = vld [vmem:[%s2914_s15 + $0x78] sm:$0xff]  ;;  %v375_v18 = vld [vmem:[%s2914_s15 + $0x80] sm:$0xff]  ;;  %v376_v19 = vld [vmem:[%s2914_s15 + $0x88] sm:$0xff]  ;;  %324 = vst.msk [vmem:[#allocation2 + $0x18] sm:$0x1] %vm322_vm2, %v2767_v34  ;;  %s2243_s28 = scalar_lea.sflag [#allocation5], %s2908_s17 }
  0x3c   : > { %v377_v20 = vld [vmem:[%s2914_s15 + $0x90] sm:$0xff]  ;;  %v378_v21 = vld [vmem:[%s2914_s15 + $0x98] sm:$0xff]  ;;  %v379_v22 = vld [vmem:[%s2914_s15 + $0xa0] sm:$0xff]  ;;  %325 = vst.msk [vmem:[#allocation2 + $0x30] sm:$0x1] %vm322_vm2, %v2767_v34  ;;  %p4080_p12 = scmp.ne.s32.totalorder %s4076_s13, 0 }
  0x3d   : > { %v380_v23 = vld [vmem:[%s2914_s15 + $0xa8] sm:$0xff]  ;;  %v381_v24 = vld [vmem:[%s2914_s15 + $0xb0] sm:$0xff]  ;;  %v382_v25 = vld [vmem:[%s2914_s15 + $0xb8] sm:$0xff]  ;;  %326 = vst.msk [vmem:[#allocation2 + $0x48] sm:$0x1] %vm322_vm2, %v2767_v34  ;;  %s2768_s21 = smov [#allocation6]  }
  0x3e   : > { %2494 = vmatmul.mubr.msk.f32.gmra.mxu0 %vm397_vm0, %v362_v5  ;;  %v383_v26 = vld [vmem:[%s2914_s15 + $0xc0] sm:$0xff]  ;;  %v384_v27 = vld [vmem:[%s2914_s15 + $0xc8] sm:$0xff]  ;;  %v385_v28 = vld [vmem:[%s2914_s15 + $0xd0] sm:$0xff]  ;;  %327 = vst.msk [vmem:[#allocation2 + $0x60] sm:$0x1] %vm322_vm2, %v2767_v34  ;;  %s2702_s9 = sshll.u32 %s2768_s21, 4  ;;  %s2703_s9 = int_to_ptr.vmem [resolvable:$false] %s2702_s9 }
  0x3f   : > { %2496 = vmatprep.mubr.msk.f32.mxu0 %vm397_vm0, %v363_v6  ;;  %v386_v29 = vld [vmem:[%s2914_s15 + $0xd8] sm:$0xff]  ;;  %v387_v30 = vld [vmem:[%s2914_s15 + $0xe0] sm:$0xff]  ;;  %v388_v31 = vld [vmem:[%s2914_s15 + $0xe8] sm:$0xff]  ;;  %328 = vst.msk [vmem:[#allocation2 + $0x78] sm:$0x1] %vm322_vm2, %v2767_v34  ;;  %s2704_s8 = scalar_lea.vmem %s2703_s9, 8192  ;;  %p2705_p5 = scmp.lt.s32.totalorder %s4017_s23, %s2703_s9 }
  0x40   : > { %v389_v32 = vld [vmem:[%s2914_s15 + $0xf0] sm:$0xff]  ;;  %v390_v33 = vld [vmem:[%s2914_s15 + $0xf8] sm:$0xff]  ;;  %329 = vst.msk [vmem:[#allocation2 + $0x90] sm:$0x1] %vm322_vm2, %v2767_v34  ;;  %330 = vst.msk [vmem:[#allocation2 + $0xa8] sm:$0x1] %vm322_vm2, %v2767_v34 }
  0x41   : > { %331 = vst.msk [vmem:[#allocation2 + $0xc0] sm:$0x1] %vm322_vm2, %v2767_v34  ;;  %332 = vst.msk [vmem:[#allocation2 + $0xd8] sm:$0x1] %vm322_vm2, %v2767_v34  ;;  %v311_v35 = vld [vmem:[%s4069_s5 + $0x38] sm:$0xff]  ;;  %v310_v36 = vld [vmem:[%s4069_s5 + $0x30] sm:$0xff] }
  0x42   : > { %2497 = vmatmul.mubr.msk.f32.gmra.mxu0 %vm397_vm0, %v364_v7  ;;  %333 = vst.msk [vmem:[#allocation2 + $0xf0] sm:$0x1] %vm322_vm2, %v2767_v34  ;;  %334 = vst.msk [vmem:[#allocation2 + $0x108] sm:$0x1] %vm322_vm2, %v2767_v34  ;;  %2538 = vmatprep.subr.mxu0 %v311_v35  ;;  %v309_v37 = vld [vmem:[%s4069_s5 + $0x28] sm:$0xff]  ;;  %v308_v38 = vld [vmem:[%s4069_s5 + $0x20] sm:$0xff] }
  0x43   : > { %2499 = vmatprep.mubr.msk.f32.mxu0 %vm397_vm0, %v365_v8  ;;  %335 = vst.msk [vmem:[#allocation2 + $0x120] sm:$0x1] %vm322_vm2, %v2767_v34  ;;  %336 = vst.msk [vmem:[#allocation2 + $0x138] sm:$0x1] %vm322_vm2, %v2767_v34  ;;  %2602 = vmatprep.subr.mxu1 %v311_v35  ;;  %v307_v39 = vld [vmem:[%s4069_s5 + $0x18] sm:$0xff]  ;;  %v306_v40 = vld [vmem:[%s4069_s5 + $0x10] sm:$0xff] }
  0x44   : > { %337 = vst.msk [vmem:[#allocation2 + $0x150] sm:$0x1] %vm322_vm2, %v2767_v34  ;;  %338 = vst.msk [vmem:[#allocation2 + $0x168] sm:$0x1] %vm322_vm2, %v2767_v34  ;;  %2539 = vmatpush3.msra.mxu0 %v311_v35  ;;  %2610 = vmatpush3.msra.mxu1 %v311_v35  ;;  %v305_v41 = vld [vmem:[%s4069_s5 + $0x8] sm:$0xff]  ;;  %v304_v42 = vld [vmem:[%s4069_s5] sm:$0xff] }
  0x45   : > { %339 = vst.msk [vmem:[#allocation2 + $0x180] sm:$0x1] %vm322_vm2, %v2767_v34  ;;  %342 = vst.msk [vmem:[#allocation2 + $0x29] sm:$0x1] %vm322_vm2, %v2767_v34  ;;  %2540 = vmatprep.subr.mxu0 %v310_v36  ;;  %2603 = vmatprep.subr.mxu1 %v310_v36  ;;  %v3057_v45 = vld [vmem:[%s4066_s2] ss:$0 sm:$0xff] }
  0x46   : > { %2500 = vmatmul.mubr.msk.f32.gmra.mxu0 %vm397_vm0, %v366_v9  ;;  %343 = vst.msk [vmem:[#allocation2 + $0x41] sm:$0x1] %vm322_vm2, %v2767_v34  ;;  %344 = vst.msk [vmem:[#allocation2 + $0x59] sm:$0x1] %vm322_vm2, %v2767_v34  ;;  %2611 = vmatpush3.msra.mxu1 %v310_v36  ;;  %v300_v48 = vld [vmem:[%s4067_s3] sm:$0x7] }
  0x47   : > { %2502 = vmatprep.mubr.msk.f32.mxu0 %vm397_vm0, %v367_v10  ;;  %345 = vst.msk [vmem:[#allocation2 + $0x71] sm:$0x1] %vm322_vm2, %v2767_v34  ;;  %346 = vst.msk [vmem:[#allocation2 + $0x89] sm:$0x1] %vm322_vm2, %v2767_v34  ;;  %2541 = vmatpush3.msra.mxu0 %v310_v36  ;;  %v3066_v52 = vrot.slane %v300_v48, %v3059_v46  ;;  %v3068_v53 = vrot.slane %v300_v48, %v950_v47  ;;  %v816_v57 = vld [vmem:[#allocation2] sm:$0xff]  ;;  %v817_v63 = vld [vmem:[#allocation2 + $0x8] sm:$0xff] }
  0x48   : > { %347 = vst.msk [vmem:[#allocation2 + $0xa1] sm:$0x1] %vm322_vm2, %v2767_v34  ;;  %348 = vst.msk [vmem:[#allocation2 + $0xb9] sm:$0x1] %vm322_vm2, %v2767_v34  ;;  %2542 = vmatprep.subr.mxu0 %v309_v37  ;;  %2604 = vmatprep.subr.mxu1 %v309_v37  ;;  %v916_v58 = vld [vmem:[#allocation2 + $0x1] sm:$0xff]  ;;  %v3074_v4 = vrot.slane %v300_v48, %v1050_v54 }
  0x49   : > { %349 = vst.msk [vmem:[#allocation2 + $0xd1] sm:$0x1] %vm322_vm2, %v2767_v34  ;;  %350 = vst.msk [vmem:[#allocation2 + $0xe9] sm:$0x1] %vm322_vm2, %v2767_v34  ;;  %2543 = vmatpush3.msra.mxu0 %v309_v37  ;;  %2612 = vmatpush3.msra.mxu1 %v309_v37  ;;  %v852_v2 = vmul.f32 %v3066_v52, %v816_v57  ;;  %v952_v3 = vmul.f32 %v3068_v53, %v916_v58  ;;  %v1016_v8 = vld [vmem:[#allocation2 + $0x2] sm:$0xff] }
  0x4a   : > { %2503 = vmatmul.mubr.msk.f32.gmra.mxu0 %vm397_vm0, %v368_v11  ;;  %351 = vst.msk [vmem:[#allocation2 + $0x101] sm:$0x1] %vm322_vm2, %v2767_v34  ;;  %352 = vst.msk [vmem:[#allocation2 + $0x119] sm:$0x1] %vm322_vm2, %v2767_v34  ;;  %2544 = vmatprep.subr.mxu0 %v308_v38  ;;  %v853_v10 = vmul.f32 %v3066_v52, %v817_v63 }
  0x4b   : > { %2505 = vmatprep.mubr.msk.f32.mxu0 %vm397_vm0, %v369_v12  ;;  %353 = vst.msk [vmem:[#allocation2 + $0x131] sm:$0x1] %vm322_vm2, %v2767_v34  ;;  %354 = vst.msk [vmem:[#allocation2 + $0x149] sm:$0x1] %vm322_vm2, %v2767_v34  ;;  %2605 = vmatprep.subr.mxu1 %v308_v38 }
  0x4c   : > { %355 = vst.msk [vmem:[#allocation2 + $0x161] sm:$0x1] %vm322_vm2, %v2767_v34  ;;  %356 = vst.msk [vmem:[#allocation2 + $0x179] sm:$0x1] %vm322_vm2, %v2767_v34  ;;  %2545 = vmatpush3.msra.mxu0 %v308_v38  ;;  %2613 = vmatpush3.msra.mxu1 %v308_v38 }
  0x4d   : > { %357 = vst.msk [vmem:[#allocation2 + $0x191] sm:$0x1] %vm322_vm2, %v2767_v34  ;;  %340 = vst.msk [vmem:[#allocation2 + $0x198] sm:$0x1] %vm322_vm2, %v2767_v34  ;;  %2546 = vmatprep.subr.mxu0 %v307_v39  ;;  %2606 = vmatprep.subr.mxu1 %v307_v39 }
  0x4e   : > { %2506 = vmatmul.mubr.msk.f32.gmra.mxu0 %vm397_vm0, %v370_v13  ;;  %317 = vst.msk [vmem:[#allocation2 + $0x10] sm:$0x3] %vm316_vm3, %v2767_v34  ;;  %321 = vst.msk [vmem:[#allocation2 + $0x1a8] sm:$0x3] %vm316_vm3, %v2767_v34  ;;  %2614 = vmatpush3.msra.mxu1 %v307_v39 }
  0x4f   : > { %2508 = vmatprep.mubr.msk.f32.mxu0 %vm397_vm0, %v371_v14  ;;  %341 = vst.msk [vmem:[#allocation2 + $0x11] sm:$0x1] %vm322_vm2, %v2767_v34  ;;  %358 = vst.msk [vmem:[#allocation2 + $0x1a9] sm:$0x1] %vm322_vm2, %v2767_v34  ;;  %2547 = vmatpush3.msra.mxu0 %v307_v39 }
  0x50   : > { %2548 = vmatprep.subr.mxu0 %v306_v40  ;;  %2607 = vmatprep.subr.mxu1 %v306_v40 }
  0x51   : > { %2549 = vmatpush3.msra.mxu0 %v306_v40  ;;  %2615 = vmatpush3.msra.mxu1 %v306_v40 }
  0x52   : > { %2509 = vmatmul.mubr.msk.f32.gmra.mxu0 %vm397_vm0, %v372_v15  ;;  %2550 = vmatprep.subr.mxu0 %v305_v41  ;;  %v301_v15 = vld [vmem:[%s4067_s3 + $0x4] sm:$0x7] }
  0x53   : > { %2511 = vmatprep.mubr.msk.f32.mxu0 %vm397_vm0, %v373_v16  ;;  %2608 = vmatprep.subr.mxu1 %v305_v41 }
  0x54   : > { %2551 = vmatpush3.msra.mxu0 %v305_v41  ;;  %2616 = vmatpush3.msra.mxu1 %v305_v41 }
  0x55   : > { %2552 = vmatprep.subr.mxu0 %v304_v42  ;;  %2609 = vmatprep.subr.mxu1 %v304_v42  ;;  %v917_v0 = vld [vmem:[#allocation2 + $0x9] sm:$0xff] }
  0x56   : > { %2512 = vmatmul.mubr.msk.f32.gmra.mxu0 %vm397_vm0, %v374_v17  ;;  %2617 = vmatpush3.msra.mxu1 %v304_v42  ;;  %v953_v11 = vmul.f32 %v3068_v53, %v917_v0  ;;  %v1017_v16 = vld [vmem:[#allocation2 + $0xa] sm:$0xff] }
  0x57   : > { %2514 = vmatprep.mubr.msk.f32.mxu0 %vm397_vm0, %v375_v18  ;;  %2553 = vmatpush3.msra.mxu0 %v304_v42  ;;  %v984_v18 = vadd.f32 %v952_v3, %v852_v2 }
  0x5a   : > { %2515 = vmatmul.mubr.msk.f32.gmra.mxu0 %vm397_vm0, %v376_v19  ;;  %v1052_v19 = vmul.f32 %v3074_v4, %v1016_v8 }
  0x5b   : > { %2517 = vmatprep.mubr.msk.f32.mxu0 %vm397_vm0, %v377_v20 }
  0x5c   : > { %v1084_v34 = vadd.f32 %v1052_v19, %v984_v18 }
  0x5e   : > { %2518 = vmatmul.mubr.msk.f32.gmra.mxu0 %vm397_vm0, %v378_v21 }
  0x5f   : > { %2520 = vmatprep.mubr.msk.f32.mxu0 %vm397_vm0, %v379_v22 }
  0x62   : > { %2521 = vmatmul.mubr.msk.f32.gmra.mxu0 %vm397_vm0, %v380_v23  ;;  %v302_v23 = vld [vmem:[%s4067_s3 + $0x8] sm:$0x7] }
  0x63   : > { %2523 = vmatprep.mubr.msk.f32.mxu0 %vm397_vm0, %v381_v24  ;;  %v3101_v35 = vrot.slane %v302_v23, %v950_v47  ;;  %v3105_v41 = vrot.slane %v302_v23, %v1050_v54  ;;  %v3108_v48 = vrot.slane %v302_v23, %v3059_v46 }
  0x66   : > { %2524 = vmatmul.mubr.msk.f32.gmra.mxu0 %vm397_vm0, %v382_v25  ;;  %v3091_v25 = vrot.slane %v301_v15, %v950_v47 }
  0x67   : > { %2526 = vmatprep.mubr.msk.f32.mxu0 %vm397_vm0, %v383_v26  ;;  %v3093_v26 = vrot.slane %v301_v15, %v1050_v54 }
  0x6a   : > { %2527 = vmatmul.mubr.msk.f32.gmra.mxu0 %vm397_vm0, %v384_v27  ;;  %v985_v27 = vadd.f32 %v953_v11, %v853_v10 }
  0x6b   : > { %2529 = vmatprep.mubr.msk.f32.mxu0 %vm397_vm0, %v385_v28  ;;  %v1053_v28 = vmul.f32 %v3074_v4, %v1017_v16 }
  0x6e   : > { %2530 = vmatmul.mubr.msk.f32.gmra.mxu0 %vm397_vm0, %v386_v29 }
  0x6f   : > { %2532 = vmatprep.mubr.msk.f32.mxu0 %vm397_vm0, %v387_v30 }
  0x72   : > { %2533 = vmatmul.mubr.msk.f32.gmra.mxu0 %vm397_vm0, %v388_v31 }
  0x73   : > { %2535 = vmatprep.mubr.msk.f32.mxu0 %vm397_vm0, %v389_v32  ;;  %v3099_v32 = vrot.slane %v301_v15, %v3059_v46 }
  0x76   : > { %2536 = vmatmul.mubr.msk.f32.gmra.mxu0 %vm397_vm0, %v390_v33 }
  0xfa   : > { %v2492_v49 = vpop.f32.mrf.mxu0 }
  0xfb   : > { %v566_v50 = vadd.f32 %v2492_v49, %v3057_v45  ;;  %v1085_v49 = vadd.f32 %v1053_v28, %v985_v27 }
  0xfc   : > { %v560_v51 = vpop.f32.mrf.mxu0 }
  0xfd   : > { %v720_v55 = vmax.f32 %v566_v50, 0.0  ;;  %v561_v56 = vadd.f32 %v3057_v45, %v560_v51 }
  0xfe   : > { %v2495_v59 = vpop.f32.mrf.mxu0 }
  0xff   : > { %v752_v60 = vmin.f32 %v720_v55, 6.0  ;;  %v719_v61 = vmax.f32 %v561_v56, 0.0  ;;  %v576_v62 = vadd.f32 %v2495_v59, %v3057_v45 }
 0x100   : > { %v570_v1 = vpop.f32.mrf.mxu0 }
 0x101   : > { %785 = vst.msk [vmem:[#allocation2 + $0x21] sm:$0xff] %vm313_vm1, %v752_v60  ;;  %v751_v5 = vmin.f32 %v719_v61, 6.0  ;;  %v722_v6 = vmax.f32 %v576_v62, 0.0  ;;  %v571_v7 = vadd.f32 %v3057_v45, %v570_v1 }
 0x102   : > { %v2498_v9 = vpop.f32.mrf.mxu0 }
 0x103   : > { %784 = vst.msk [vmem:[#allocation2 + $0x19] sm:$0xff] %vm313_vm1, %v751_v5  ;;  %v754_v12 = vmin.f32 %v722_v6, 6.0  ;;  %v721_v13 = vmax.f32 %v571_v7, 0.0  ;;  %v586_v14 = vadd.f32 %v2498_v9, %v3057_v45 }
 0x104   : > { %v580_v17 = vpop.f32.mrf.mxu0 }
 0x105   : > { %787 = vst.msk [vmem:[#allocation2 + $0x39] sm:$0xff] %vm313_vm1, %v754_v12  ;;  %v753_v20 = vmin.f32 %v721_v13, 6.0  ;;  %v724_v21 = vmax.f32 %v586_v14, 0.0  ;;  %v581_v22 = vadd.f32 %v3057_v45, %v580_v17 }
 0x106   : > { %v2501_v24 = vpop.f32.mrf.mxu0 }
 0x107   : > { %786 = vst.msk [vmem:[#allocation2 + $0x31] sm:$0xff] %vm313_vm1, %v753_v20  ;;  %v756_v29 = vmin.f32 %v724_v21, 6.0  ;;  %v723_v30 = vmax.f32 %v581_v22, 0.0  ;;  %v596_v31 = vadd.f32 %v2501_v24, %v3057_v45 }
 0x108   : > { %v590_v33 = vpop.f32.mrf.mxu0  ;;  %v1217_v36 = vld [vmem:[#allocation2 + $0x21] sm:$0xff] }
 0x109   : > { %v1317_v37 = vld [vmem:[#allocation2 + $0x22] sm:$0xff]  ;;  %789 = vst.msk [vmem:[#allocation2 + $0x51] sm:$0xff] %vm313_vm1, %v756_v29  ;;  %v755_v38 = vmin.f32 %v723_v30, 6.0  ;;  %v726_v39 = vmax.f32 %v596_v31, 0.0  ;;  %v591_v40 = vadd.f32 %v3057_v45, %v590_v33  ;;  %v1253_v47 = vmul.f32 %v3091_v25, %v1217_v36 }
 0x10a   : > { %v2504_v42 = vpop.f32.mrf.mxu0  ;;  %v1116_v43 = vld [vmem:[#allocation2 + $0x18] sm:$0xff]  ;;  %v1353_v50 = vmul.f32 %v3093_v26, %v1317_v37  ;;  %v3115_v58 = vld [vmem:[#allocation2 + $0x20] sm:$0xff]  ;;  %v3121_v61 = vmul.f32 %v1217_v36, %v3068_v53  ;;  %v3124_v62 = vmul.f32 %v1317_v37, %v3074_v4 }
 0x10b   : > { %v1216_v44 = vld [vmem:[#allocation2 + $0x19] sm:$0xff]  ;;  %788 = vst.msk [vmem:[#allocation2 + $0x49] sm:$0xff] %vm313_vm1, %v755_v38  ;;  %v758_v51 = vmin.f32 %v726_v39, 6.0  ;;  %v725_v55 = vmax.f32 %v591_v40, 0.0  ;;  %v606_v56 = vadd.f32 %v2504_v42, %v3057_v45  ;;  %v1152_v54 = vmul.f32 %v3099_v32, %v1116_v43 }
 0x10c   : > { %v1316_v57 = vld [vmem:[#allocation2 + $0x1a] sm:$0xff]  ;;  %v600_v59 = vpop.f32.mrf.mxu0  ;;  %v1252_v46 = vmul.f32 %v3091_v25, %v1216_v44  ;;  %v1153_v60 = vmul.f32 %v3099_v32, %v3115_v58  ;;  %v854_v10 = vmul.f32 %v1116_v43, %v3066_v52  ;;  %v954_v11 = vmul.f32 %v1216_v44, %v3068_v53 }
 0x10d   : > { %791 = vst.msk [vmem:[#allocation2 + $0x69] sm:$0xff] %vm313_vm1, %v758_v51  ;;  %v757_v63 = vmin.f32 %v725_v55, 6.0  ;;  %v728_v0 = vmax.f32 %v606_v56, 0.0  ;;  %v601_v1 = vadd.f32 %v3057_v45, %v600_v59  ;;  %v1184_v2 = vadd.f32 %v1152_v54, %v1084_v34  ;;  %v3128_v3 = vld [vmem:[#allocation2 + $0x39] sm:$0xff] }
 0x10e   : > { %v2507_v5 = vpop.f32.mrf.mxu0  ;;  %v1352_v6 = vmul.f32 %v3093_v26, %v1316_v57  ;;  %v3131_v7 = vld [vmem:[#allocation2 + $0x30] sm:$0xff]  ;;  %v1185_v9 = vadd.f32 %v1153_v60, %v1085_v49  ;;  %v3139_v16 = vld [vmem:[#allocation2 + $0x38] sm:$0xff]  ;;  %v1554_v21 = vmul.f32 %v3101_v35, %v3128_v3  ;;  %v986_v33 = vadd.f32 %v954_v11, %v854_v10  ;;  %v3169_v59 = vld [vmem:[%s4068_s4] ss:$0 sm:$0xff] }
 0x10f   : > { %v3133_v8 = vld [vmem:[#allocation2 + $0x31] sm:$0xff]  ;;  %790 = vst.msk [vmem:[#allocation2 + $0x61] sm:$0xff] %vm313_vm1, %v757_v63  ;;  %v760_v12 = vmin.f32 %v728_v0, 6.0  ;;  %v727_v13 = vmax.f32 %v601_v1, 0.0  ;;  %v616_v14 = vadd.f32 %v2507_v5, %v3057_v45  ;;  %v1284_v15 = vadd.f32 %v1252_v46, %v1184_v2  ;;  %v3156_v40 = vld [vmem:[#allocation2 + $0x3a] sm:$0xff] }
 0x110   : > { %v610_v17 = vpop.f32.mrf.mxu0  ;;  %v1453_v18 = vmul.f32 %v3108_v48, %v3131_v7  ;;  %v1553_v19 = vmul.f32 %v3101_v35, %v3133_v8  ;;  %v1285_v20 = vadd.f32 %v1253_v47, %v1185_v9  ;;  %v3149_v28 = vld [vmem:[#allocation2 + $0x32] sm:$0xff]  ;;  %v1454_v31 = vmul.f32 %v3108_v48, %v3139_v16 }
 0x111   : > { %793 = vst.msk [vmem:[#allocation2 + $0x81] sm:$0xff] %vm313_vm1, %v760_v12  ;;  %v759_v22 = vmin.f32 %v727_v13, 6.0  ;;  %v730_v23 = vmax.f32 %v616_v14, 0.0  ;;  %v611_v24 = vadd.f32 %v3057_v45, %v610_v17  ;;  %v1384_v27 = vadd.f32 %v1352_v6, %v1284_v15 }
 0x112   : > { %v2510_v29 = vpop.f32.mrf.mxu0  ;;  %v1385_v30 = vadd.f32 %v1353_v50, %v1285_v20  ;;  %v1054_v34 = vmul.f32 %v1316_v57, %v3074_v4  ;;  %v1653_v43 = vmul.f32 %v3105_v41, %v3149_v28  ;;  %v1154_v47 = vmul.f32 %v3131_v7, %v3099_v32  ;;  %v3164_v54 = vld [vmem:[#allocation2 + $0x48] sm:$0xff] }
 0x113   : > { %792 = vst.msk [vmem:[#allocation2 + $0x79] sm:$0xff] %vm313_vm1, %v759_v22  ;;  %v762_v36 = vmin.f32 %v730_v23, 6.0  ;;  %v729_v37 = vmax.f32 %v611_v24, 0.0  ;;  %v626_v38 = vadd.f32 %v2510_v29, %v3057_v45  ;;  %v1485_v39 = vadd.f32 %v1453_v18, %v1384_v27  ;;  %v3177_v9 = vld [vmem:[#allocation2 + $0x49] sm:$0xff] }
 0x114   : > { %v620_v42 = vpop.f32.mrf.mxu0  ;;  %v1486_v44 = vadd.f32 %v1454_v31, %v1385_v30  ;;  %v1086_v49 = vadd.f32 %v1054_v34, %v986_v33  ;;  %v1654_v60 = vmul.f32 %v3105_v41, %v3156_v40  ;;  %v1254_v0 = vmul.f32 %v3133_v8, %v3091_v25  ;;  %v3193_v33 = vld [vmem:[#allocation2 + $0x4a] sm:$0xff] }
 0x115   : > { %795 = vst.msk [vmem:[#allocation2 + $0x99] sm:$0xff] %vm313_vm1, %v762_v36  ;;  %v761_v50 = vmin.f32 %v729_v37, 6.0  ;;  %v732_v51 = vmax.f32 %v626_v38, 0.0  ;;  %v621_v55 = vadd.f32 %v3057_v45, %v620_v42  ;;  %v1585_v56 = vadd.f32 %v1553_v19, %v1485_v39 }
 0x116   : > { %v2513_v57 = vpop.f32.mrf.mxu0  ;;  %v1586_v46 = vadd.f32 %v1554_v21, %v1486_v44  ;;  %v1186_v63 = vadd.f32 %v1154_v47, %v1086_v49  ;;  %v1354_v13 = vmul.f32 %v3149_v28, %v3093_v26  ;;  %v1455_v14 = vmul.f32 %v3108_v48, %v3164_v54 }
 0x117   : > { %794 = vst.msk [vmem:[#allocation2 + $0x91] sm:$0xff] %vm313_vm1, %v761_v50  ;;  %v764_v1 = vmin.f32 %v732_v51, 6.0  ;;  %v731_v2 = vmax.f32 %v621_v55, 0.0  ;;  %v636_v5 = vadd.f32 %v2513_v57, %v3057_v45  ;;  %v1685_v6 = vadd.f32 %v1653_v43, %v1585_v56 }
 0x118   : > { %v630_v10 = vpop.f32.mrf.mxu0  ;;  %v1686_v11 = vadd.f32 %v1654_v60, %v1586_v46  ;;  %v1286_v12 = vadd.f32 %v1254_v0, %v1186_v63  ;;  %v1555_v23 = vmul.f32 %v3101_v35, %v3177_v9  ;;  %v855_v24 = vmul.f32 %v3115_v58, %v3066_v52  ;;  %v3206_v46 = vld [vmem:[#allocation2 + $0x50] sm:$0xff] }
 0x119   : > { %797 = vst.msk [vmem:[#allocation2 + $0xb1] sm:$0xff] %vm313_vm1, %v764_v1  ;;  %v763_v15 = vmin.f32 %v731_v2, 6.0  ;;  %v734_v17 = vmax.f32 %v636_v5, 0.0  ;;  %v631_v18 = vadd.f32 %v3057_v45, %v630_v10  ;;  %v1723_v19 = vadd.f32 %v3169_v59, %v1685_v6 }
 0x11a   : > { %v2516_v20 = vpop.f32.mrf.mxu0  ;;  %v1724_v21 = vadd.f32 %v3169_v59, %v1686_v11  ;;  %v1386_v22 = vadd.f32 %v1354_v13, %v1286_v12  ;;  %v987_v38 = vadd.f32 %v3121_v61, %v855_v24  ;;  %v1155_v39 = vmul.f32 %v3139_v16, %v3099_v32  ;;  %v3228_v24 = vld [vmem:[#allocation2 + $0x52] sm:$0xff] }
 0x11b   : > { %796 = vst.msk [vmem:[#allocation2 + $0xa9] sm:$0xff] %vm313_vm1, %v763_v15  ;;  %v766_v27 = vmin.f32 %v734_v17, 6.0  ;;  %v733_v29 = vmax.f32 %v631_v18, 0.0  ;;  %v646_v30 = vadd.f32 %v2516_v20, %v3057_v45  ;;  %v1755_v31 = vmax.f32 %v1723_v19, 0.0  ;;  %v3224_v20 = vld [vmem:[#allocation2 + $0x51] sm:$0xff] }
 0x11c   : > { %v640_v34 = vpop.f32.mrf.mxu0  ;;  %v1756_v36 = vmax.f32 %v1724_v21, 0.0  ;;  %v1487_v37 = vadd.f32 %v1455_v14, %v1386_v22  ;;  %v1655_v51 = vmul.f32 %v3105_v41, %v3193_v33  ;;  %v1087_v55 = vadd.f32 %v3124_v62, %v987_v38 }
 0x11d   : > { %799 = vst.msk [vmem:[#allocation2 + $0xc9] sm:$0xff] %vm313_vm1, %v766_v27  ;;  %v765_v58 = vmin.f32 %v733_v29, 6.0  ;;  %v736_v42 = vmax.f32 %v646_v30, 0.0  ;;  %v641_v43 = vadd.f32 %v3057_v45, %v640_v34  ;;  %v1787_v44 = vmin.f32 %v1755_v31, 6.0 }
 0x11e   : > { %v2519_v49 = vpop.f32.mrf.mxu0  ;;  %v1788_v47 = vmin.f32 %v1756_v36, 6.0  ;;  %v1587_v50 = vadd.f32 %v1555_v23, %v1487_v37  ;;  %v1187_v0 = vadd.f32 %v1155_v39, %v1087_v55  ;;  %v1255_v1 = vmul.f32 %v3128_v3, %v3091_v25 }
 0x11f   : > { %798 = vst.msk [vmem:[#allocation2 + $0xc1] sm:$0xff] %vm313_vm1, %v765_v58  ;;  %v768_v61 = vmin.f32 %v736_v42, 6.0  ;;  %v735_v56 = vmax.f32 %v641_v43, 0.0  ;;  %v656_v57 = vadd.f32 %v2519_v49, %v3057_v45  ;;  %2554 = vmatprep.mubr.msk.f32.mxu0 %vm313_vm1, %v1787_v44  ;;  %v1355_v62 = vmul.f32 %v3156_v40, %v3093_v26 }
 0x120   : > { %v650_v60 = vpop.f32.mrf.mxu0  ;;  %2555 = vmatmul.mubr.msk.f32.vlgmr.msra.gmra.mxu0 %vm313_vm1, %v1788_v47  ;;  %v1687_v63 = vadd.f32 %v1655_v51, %v1587_v50  ;;  %v856_v10 = vmul.f32 %v3131_v7, %v3066_v52  ;;  %v1287_v13 = vadd.f32 %v1255_v1, %v1187_v0  ;;  %v1456_v14 = vmul.f32 %v3108_v48, %v3206_v46 }
 0x121   : > { %801 = vst.msk [vmem:[#allocation2 + $0xe1] sm:$0xff] %vm313_vm1, %v768_v61  ;;  %v767_v2 = vmin.f32 %v735_v56, 6.0  ;;  %v738_v5 = vmax.f32 %v656_v57, 0.0  ;;  %v651_v6 = vadd.f32 %v3057_v45, %v650_v60  ;;  %v956_v15 = vmul.f32 %v3133_v8, %v3068_v53  ;;  %v3246_v56 = vld [vmem:[#allocation2 + $0x60] sm:$0xff] }
 0x122   : > { %v2522_v11 = vpop.f32.mrf.mxu0  ;;  %v1725_v12 = vadd.f32 %v3169_v59, %v1687_v63  ;;  %v1056_v7 = vmul.f32 %v3149_v28, %v3074_v4  ;;  %v1387_v23 = vadd.f32 %v1355_v62, %v1287_v13  ;;  %v1156_v8 = vmul.f32 %v3164_v54, %v3099_v32  ;;  %v3248_v57 = vld [vmem:[#allocation2 + $0x61] sm:$0xff] }
 0x123   : > { %800 = vst.msk [vmem:[#allocation2 + $0xd9] sm:$0xff] %vm313_vm1, %v767_v2  ;;  %v770_v17 = vmin.f32 %v738_v5, 6.0  ;;  %v737_v18 = vmax.f32 %v651_v6, 0.0  ;;  %v666_v19 = vadd.f32 %v2522_v11, %v3057_v45  ;;  %v988_v27 = vadd.f32 %v956_v15, %v856_v10  ;;  %v3255_v2 = vld [vmem:[#allocation2 + $0x62] sm:$0xff] }
 0x124   : > { %v1757_v21 = vmax.f32 %v1725_v12, 0.0  ;;  %v660_v22 = vpop.f32.mrf.mxu0  ;;  %v1488_v36 = vadd.f32 %v1456_v14, %v1387_v23  ;;  %v1556_v28 = vmul.f32 %v3101_v35, %v3224_v20  ;;  %v1656_v42 = vmul.f32 %v3105_v41, %v3228_v24 }
 0x125   : > { %803 = vst.msk [vmem:[#allocation2 + $0xf9] sm:$0xff] %vm313_vm1, %v770_v17  ;;  %v769_v29 = vmin.f32 %v737_v18, 6.0  ;;  %v740_v30 = vmax.f32 %v666_v19, 0.0  ;;  %v661_v31 = vadd.f32 %v3057_v45, %v660_v22  ;;  %v1088_v38 = vadd.f32 %v1056_v7, %v988_v27  ;;  %v3267_v17 = vld [vmem:[#allocation2 + $0x68] sm:$0xff] }
 0x126   : > { %v1789_v34 = vmin.f32 %v1757_v21, 6.0  ;;  %v2525_v37 = vpop.f32.mrf.mxu0  ;;  %v1588_v44 = vadd.f32 %v1556_v28, %v1488_v36  ;;  %v1256_v47 = vmul.f32 %v3177_v9, %v3091_v25  ;;  %v857_v51 = vmul.f32 %v3139_v16, %v3066_v52  ;;  %v3274_v21 = vld [vmem:[#allocation2 + $0x69] sm:$0xff] }
 0x127   : > { %802 = vst.msk [vmem:[#allocation2 + $0xf1] sm:$0xff] %vm313_vm1, %v769_v29  ;;  %v772_v39 = vmin.f32 %v740_v30, 6.0  ;;  %v739_v58 = vmax.f32 %v661_v31, 0.0  ;;  %v676_v43 = vadd.f32 %v2525_v37, %v3057_v45  ;;  %v1188_v49 = vadd.f32 %v1156_v8, %v1088_v38 }
 0x128   : > { %2557 = vmatprep.mubr.msk.f32.mxu1 %vm313_vm1, %v1789_v34  ;;  %v670_v50 = vpop.f32.mrf.mxu0  ;;  %v957_v63 = vmul.f32 %v3128_v3, %v3068_v53  ;;  %v1688_v0 = vadd.f32 %v1656_v42, %v1588_v44  ;;  %v1356_v62 = vmul.f32 %v3193_v33, %v3093_v26  ;;  %v1057_v16 = vmul.f32 %v3156_v40, %v3074_v4  ;;  %v3284_v34 = vld [vmem:[#allocation2 + $0x6a] sm:$0xff] }
 0x129   : > { %805 = vst.msk [vmem:[#allocation2 + $0x111] sm:$0xff] %vm313_vm1, %v772_v39  ;;  %v771_v55 = vmin.f32 %v739_v58, 6.0  ;;  %v742_v61 = vmax.f32 %v676_v43, 0.0  ;;  %v671_v60 = vadd.f32 %v3057_v45, %v670_v50  ;;  %v1288_v1 = vadd.f32 %v1256_v47, %v1188_v49  ;;  %v3294_v49 = vld [vmem:[#allocation2 + $0x78] sm:$0xff] }
 0x12a   : > { %v989_v10 = vadd.f32 %v957_v63, %v857_v51  ;;  %v1157_v11 = vmul.f32 %v3206_v46, %v3099_v32  ;;  %v2528_v12 = vpop.f32.mrf.mxu0  ;;  %v1726_v3 = vadd.f32 %v3169_v59, %v1688_v0  ;;  %v1457_v14 = vmul.f32 %v3108_v48, %v3246_v56 }
 0x12b   : > { %804 = vst.msk [vmem:[#allocation2 + $0x109] sm:$0xff] %vm313_vm1, %v771_v55  ;;  %v774_v5 = vmin.f32 %v742_v61, 6.0  ;;  %v741_v6 = vmax.f32 %v671_v60, 0.0  ;;  %v1388_v13 = vadd.f32 %v1356_v62, %v1288_v1  ;;  %v1557_v15 = vmul.f32 %v3101_v35, %v3248_v57  ;;  %v3301_v55 = vld [vmem:[#allocation2 + $0x79] sm:$0xff] }
 0x12c   : > { %v1657_v40 = vmul.f32 %v3105_v41, %v3255_v2  ;;  %v1089_v19 = vadd.f32 %v1057_v16, %v989_v10  ;;  %v1257_v7 = vmul.f32 %v3224_v20, %v3091_v25  ;;  %v1758_v22 = vmax.f32 %v1726_v3, 0.0  ;;  %v680_v39 = vpop.f32.mrf.mxu0  ;;  %v3312_v16 = vld [vmem:[#allocation2 + $0x7a] sm:$0xff] }
 0x12d   : > { %807 = vst.msk [vmem:[#allocation2 + $0x129] sm:$0xff] %vm313_vm1, %v774_v5  ;;  %v773_v18 = vmin.f32 %v741_v6, 6.0  ;;  %v1489_v23 = vadd.f32 %v1457_v14, %v1388_v13  ;;  %v686_v27 = vadd.f32 %v2528_v12, %v3057_v45  ;;  %v858_v8 = vmul.f32 %v3164_v54, %v3066_v52 }
 0x12e   : > { %v1189_v29 = vadd.f32 %v1157_v11, %v1089_v19  ;;  %v1357_v30 = vmul.f32 %v3228_v24, %v3093_v26  ;;  %v1458_v31 = vmul.f32 %v3108_v48, %v3267_v17  ;;  %v958_v36 = vmul.f32 %v3177_v9, %v3068_v53  ;;  %v2531_v12 = vpop.f32.mrf.mxu0 }
 0x12f   : > { %806 = vst.msk [vmem:[#allocation2 + $0x121] sm:$0xff] %vm313_vm1, %v773_v18  ;;  %v1790_v28 = vmin.f32 %v1758_v22, 6.0  ;;  %v1589_v37 = vadd.f32 %v1557_v15, %v1489_v23  ;;  %v1558_v38 = vmul.f32 %v3101_v35, %v3274_v21  ;;  %v744_v54 = vmax.f32 %v686_v27, 0.0 }
 0x130   : > { %v1289_v58 = vadd.f32 %v1257_v7, %v1189_v29  ;;  %v990_v42 = vadd.f32 %v958_v36, %v858_v8  ;;  %v1058_v43 = vmul.f32 %v3193_v33, %v3074_v4  ;;  %v1158_v44 = vmul.f32 %v3246_v56, %v3099_v32 }
 0x131   : > { %2558 = vmatmul.mubr.msk.f32.vlgmr.msra.gmra.mxu1 %vm313_vm1, %v1790_v28  ;;  %v1689_v9 = vadd.f32 %v1657_v40, %v1589_v37  ;;  %v1658_v47 = vmul.f32 %v3105_v41, %v3284_v34  ;;  %v776_v50 = vmin.f32 %v744_v54, 6.0  ;;  %v1258_v51 = vmul.f32 %v3248_v57, %v3091_v25 }
 0x132   : > { %v1389_v61 = vadd.f32 %v1357_v30, %v1289_v58  ;;  %v1090_v60 = vadd.f32 %v1058_v43, %v990_v42  ;;  %v681_v33 = vadd.f32 %v3057_v45, %v680_v39  ;;  %v859_v63 = vmul.f32 %v3206_v46, %v3066_v52  ;;  %v3330_v30 = vld [vmem:[#allocation2 + $0x81] sm:$0xff] }
 0x133   : > { %v1727_v0 = vadd.f32 %v3169_v59, %v1689_v9  ;;  %809 = vst.msk [vmem:[#allocation2 + $0x141] sm:$0xff] %vm313_vm1, %v776_v50  ;;  %v1358_v1 = vmul.f32 %v3255_v2, %v3093_v26  ;;  %v1459_v62 = vmul.f32 %v3108_v48, %v3294_v49  ;;  %v959_v5 = vmul.f32 %v3224_v20, %v3068_v53 }
 0x134   : > { %v1490_v6 = vadd.f32 %v1458_v31, %v1389_v61  ;;  %v1190_v10 = vadd.f32 %v1158_v44, %v1090_v60  ;;  %v1559_v46 = vmul.f32 %v3101_v35, %v3301_v55  ;;  %v743_v11 = vmax.f32 %v681_v33, 0.0 }
 0x135   : > { %v1759_v3 = vmax.f32 %v1727_v0, 0.0  ;;  %v991_v13 = vadd.f32 %v959_v5, %v859_v63  ;;  %v1059_v14 = vmul.f32 %v3228_v24, %v3074_v4  ;;  %v1159_v15 = vmul.f32 %v3267_v17, %v3099_v32  ;;  %v3328_v24 = vld [vmem:[#allocation2 + $0x80] sm:$0xff] }
 0x136   : > { %v1590_v40 = vadd.f32 %v1558_v38, %v1490_v6  ;;  %v1290_v18 = vadd.f32 %v1258_v51, %v1190_v10  ;;  %v1659_v20 = vmul.f32 %v3105_v41, %v3312_v16  ;;  %v775_v19 = vmin.f32 %v743_v11, 6.0  ;;  %v3339_v38 = vld [vmem:[#allocation2 + $0x82] sm:$0xff]  ;;  %v3358_v10 = vld [vmem:[#allocation2 + $0x90] sm:$0xff] }
 0x137   : > { %v1791_v7 = vmin.f32 %v1759_v3, 6.0  ;;  %v1091_v22 = vadd.f32 %v1059_v14, %v991_v13  ;;  %v1259_v23 = vmul.f32 %v3274_v21, %v3091_v25  ;;  %v696_v27 = vadd.f32 %v2531_v12, %v3057_v45  ;;  %v3366_v13 = vld [vmem:[#allocation2 + $0x92] sm:$0xff] }
 0x138   : > { %v1690_v8 = vadd.f32 %v1658_v47, %v1590_v40  ;;  %v1390_v29 = vadd.f32 %v1358_v1, %v1290_v18  ;;  %808 = vst.msk [vmem:[#allocation2 + $0x139] sm:$0xff] %vm313_vm1, %v775_v19  ;;  %v860_v31 = vmul.f32 %v3246_v56, %v3066_v52  ;;  %v960_v36 = vmul.f32 %v3248_v57, %v3068_v53  ;;  %v690_v57 = vpop.f32.mrf.mxu0 }
 0x139   : > { %2560 = vmatprep.mubr.msk.f32.mxu1 %vm313_vm1, %v1791_v7  ;;  %v1191_v28 = vadd.f32 %v1159_v15, %v1091_v22  ;;  %v1359_v37 = vmul.f32 %v3284_v34, %v3093_v26  ;;  %v746_v54 = vmax.f32 %v696_v27, 0.0  ;;  %v1060_v39 = vmul.f32 %v3255_v2, %v3074_v4 }
 0x13a   : > { %v1728_v58 = vadd.f32 %v3169_v59, %v1690_v8  ;;  %v1491_v42 = vadd.f32 %v1459_v62, %v1390_v29  ;;  %v992_v43 = vadd.f32 %v960_v36, %v860_v31  ;;  %v1160_v56 = vmul.f32 %v3294_v49, %v3099_v32 }
 0x13b   : > { %v1291_v44 = vadd.f32 %v1259_v23, %v1191_v28  ;;  %v1460_v9 = vmul.f32 %v3108_v48, %v3328_v24  ;;  %v1560_v47 = vmul.f32 %v3101_v35, %v3330_v30  ;;  %v778_v50 = vmin.f32 %v746_v54, 6.0 }
 0x13c   : > { %v1760_v51 = vmax.f32 %v1728_v58, 0.0  ;;  %v1591_v61 = vadd.f32 %v1559_v46, %v1491_v42  ;;  %v1660_v2 = vmul.f32 %v3105_v41, %v3339_v38  ;;  %v1092_v60 = vadd.f32 %v1060_v39, %v992_v43  ;;  %v3360_v46 = vld [vmem:[#allocation2 + $0x91] sm:$0xff]  ;;  %v3388_v43 = vld [vmem:[#allocation2 + $0x99] sm:$0xff] }
 0x13d   : > { %v1391_v33 = vadd.f32 %v1359_v37, %v1291_v44  ;;  %811 = vst.msk [vmem:[#allocation2 + $0x159] sm:$0xff] %vm313_vm1, %v778_v50  ;;  %v1260_v63 = vmul.f32 %v3301_v55, %v3091_v25  ;;  %v691_v0 = vadd.f32 %v3057_v45, %v690_v57  ;;  %v861_v1 = vmul.f32 %v3267_v17, %v3066_v52  ;;  %v3386_v42 = vld [vmem:[#allocation2 + $0x98] sm:$0xff] }
 0x13e   : > { %v1792_v62 = vmin.f32 %v1760_v51, 6.0  ;;  %v1691_v5 = vadd.f32 %v1659_v20, %v1591_v61  ;;  %v1192_v6 = vadd.f32 %v1160_v56, %v1092_v60  ;;  %v961_v11 = vmul.f32 %v3274_v21, %v3068_v53  ;;  %v2534_v21 = vpop.f32.mrf.mxu0 }
 0x13f   : > { %v1492_v12 = vadd.f32 %v1460_v9, %v1391_v33  ;;  %v1360_v3 = vmul.f32 %v3312_v16, %v3093_v26  ;;  %v745_v14 = vmax.f32 %v691_v0, 0.0  ;;  %v1061_v17 = vmul.f32 %v3284_v34, %v3074_v4  ;;  %v3395_v9 = vld [vmem:[#allocation2 + $0x9a] sm:$0xff] }
 0x140   : > { %2561 = vmatmul.mubr.msk.f32.gmra.mxu1 %vm313_vm1, %v1792_v62  ;;  %v1729_v15 = vadd.f32 %v3169_v59, %v1691_v5  ;;  %v1292_v40 = vadd.f32 %v1260_v63, %v1192_v6  ;;  %v993_v18 = vadd.f32 %v961_v11, %v861_v1  ;;  %v1161_v20 = vmul.f32 %v3328_v24, %v3099_v32 }
 0x141   : > { %v1592_v19 = vadd.f32 %v1560_v47, %v1492_v12  ;;  %v1461_v7 = vmul.f32 %v3108_v48, %v3358_v10  ;;  %v1561_v22 = vmul.f32 %v3101_v35, %v3360_v46  ;;  %v777_v23 = vmin.f32 %v745_v14, 6.0 }
 0x142   : > { %v1761_v27 = vmax.f32 %v1729_v15, 0.0  ;;  %v1392_v34 = vadd.f32 %v1360_v3, %v1292_v40  ;;  %v1661_v8 = vmul.f32 %v3105_v41, %v3366_v13  ;;  %v1093_v29 = vadd.f32 %v1061_v17, %v993_v18  ;;  %v3415_v40 = vld [vmem:[#allocation2 + $0xa8] sm:$0xff] }
 0x143   : > { %v1692_v31 = vadd.f32 %v1660_v2, %v1592_v19  ;;  %810 = vst.msk [vmem:[#allocation2 + $0x151] sm:$0xff] %vm313_vm1, %v777_v23  ;;  %v1261_v36 = vmul.f32 %v3330_v30, %v3091_v25  ;;  %v706_v28 = vadd.f32 %v2534_v21, %v3057_v45  ;;  %v862_v37 = vmul.f32 %v3294_v49, %v3066_v52  ;;  %v3417_v18 = vld [vmem:[#allocation2 + $0xa9] sm:$0xff] }
 0x144   : > { %v1793_v54 = vmin.f32 %v1761_v27, 6.0  ;;  %v1493_v39 = vadd.f32 %v1461_v7, %v1392_v34  ;;  %v1193_v58 = vadd.f32 %v1161_v20, %v1093_v29  ;;  %v962_v56 = vmul.f32 %v3301_v55, %v3068_v53  ;;  %v700_v55 = vpop.f32.mrf.mxu0  ;;  %v3428_v34 = vld [vmem:[#allocation2 + $0xaa] sm:$0xff] }
 0x145   : > { %v1730_v57 = vadd.f32 %v3169_v59, %v1692_v31  ;;  %v1361_v44 = vmul.f32 %v3339_v38, %v3093_v26  ;;  %v748_v47 = vmax.f32 %v706_v28, 0.0  ;;  %v1062_v49 = vmul.f32 %v3312_v16, %v3074_v4 }
 0x146   : > { %2563 = vmatprep.mubr.msk.f32.mxu1 %vm313_vm1, %v1793_v54  ;;  %v1593_v50 = vadd.f32 %v1561_v22, %v1493_v39  ;;  %v1293_v51 = vadd.f32 %v1261_v36, %v1193_v58  ;;  %v994_v61 = vadd.f32 %v962_v56, %v862_v37  ;;  %v1162_v2 = vmul.f32 %v3358_v10, %v3099_v32  ;;  %v2537_v29 = vpop.f32.mrf.mxu0 }
 0x147   : > { %v1762_v60 = vmax.f32 %v1730_v57, 0.0  ;;  %v1462_v33 = vmul.f32 %v3108_v48, %v3386_v42  ;;  %v1562_v63 = vmul.f32 %v3101_v35, %v3388_v43  ;;  %v780_v0 = vmin.f32 %v748_v47, 6.0 }
 0x148   : > { %v1693_v1 = vadd.f32 %v1661_v8, %v1593_v50  ;;  %v1393_v62 = vadd.f32 %v1361_v44, %v1293_v51  ;;  %v1662_v16 = vmul.f32 %v3105_v41, %v3395_v9  ;;  %v1094_v5 = vadd.f32 %v1062_v49, %v994_v61  ;;  %v3446_v51 = vld [vmem:[#allocation2 + $0xb0] sm:$0xff] }
 0x149   : > { %v1794_v6 = vmin.f32 %v1762_v60, 6.0  ;;  %813 = vst.msk [vmem:[#allocation2 + $0x171] sm:$0xff] %vm313_vm1, %v780_v0  ;;  %v1262_v11 = vmul.f32 %v3360_v46, %v3091_v25  ;;  %v701_v12 = vadd.f32 %v3057_v45, %v700_v55  ;;  %v863_v3 = vmul.f32 %v3328_v24, %v3066_v52  ;;  %v3448_v61 = vld [vmem:[#allocation2 + $0xb1] sm:$0xff] }
 0x14a   : > { %v1731_v14 = vadd.f32 %v3169_v59, %v1693_v1  ;;  %v1494_v17 = vadd.f32 %v1462_v33, %v1393_v62  ;;  %v1194_v15 = vadd.f32 %v1162_v2, %v1094_v5  ;;  %v963_v20 = vmul.f32 %v3330_v30, %v3068_v53  ;;  %v710_v1 = vpop.f32.mrf.mxu0 }
 0x14b   : > { %2564 = vmatmul.mubr.msk.f32.gmra.mxu1 %vm313_vm1, %v1794_v6  ;;  %v1362_v21 = vmul.f32 %v3366_v13, %v3093_v26  ;;  %v747_v19 = vmax.f32 %v701_v12, 0.0  ;;  %v1063_v24 = vmul.f32 %v3339_v38, %v3074_v4  ;;  %v1163_v7 = vmul.f32 %v3386_v42, %v3099_v32 }
 0x14c   : > { %v1763_v22 = vmax.f32 %v1731_v14, 0.0  ;;  %v1594_v23 = vadd.f32 %v1562_v63, %v1494_v17  ;;  %v1294_v27 = vadd.f32 %v1262_v11, %v1194_v15  ;;  %v995_v8 = vadd.f32 %v963_v20, %v863_v3  ;;  %v1628_v14 = vld [vmem:[#allocation2 + $0xb2] sm:$0xff] }
 0x14d   : > { %v1463_v30 = vmul.f32 %v3108_v48, %v3415_v40  ;;  %v1563_v31 = vmul.f32 %v3101_v35, %v3417_v18  ;;  %v779_v36 = vmin.f32 %v747_v19, 6.0  ;;  %v1663_v39 = vmul.f32 %v3105_v41, %v3428_v34 }
 0x14e   : > { %v1795_v28 = vmin.f32 %v1763_v22, 6.0  ;;  %v1694_v37 = vadd.f32 %v1662_v16, %v1594_v23  ;;  %v1394_v38 = vadd.f32 %v1362_v21, %v1294_v27  ;;  %v1095_v54 = vadd.f32 %v1063_v24, %v995_v8  ;;  %v3472_v22 = vld [vmem:[#allocation2 + $0xc0] sm:$0xff] }
 0x14f   : > { %812 = vst.msk [vmem:[#allocation2 + $0x169] sm:$0xff] %vm313_vm1, %v779_v36  ;;  %v716_v58 = vadd.f32 %v2537_v29, %v3057_v45  ;;  %v864_v56 = vmul.f32 %v3358_v10, %v3066_v52  ;;  %v964_v57 = vmul.f32 %v3360_v46, %v3068_v53  ;;  %v1263_v50 = vmul.f32 %v3388_v43, %v3091_v25  ;;  %v3476_v27 = vld [vmem:[#allocation2 + $0xc1] sm:$0xff] }
 0x150   : > { %2566 = vmatprep.mubr.msk.f32.mxu1 %vm313_vm1, %v1795_v28  ;;  %v1732_v44 = vadd.f32 %v3169_v59, %v1694_v37  ;;  %v1495_v47 = vadd.f32 %v1463_v30, %v1394_v38  ;;  %v1195_v49 = vadd.f32 %v1163_v7, %v1095_v54  ;;  %v1064_v10 = vmul.f32 %v3366_v13, %v3074_v4  ;;  %v3483_v37 = vld [vmem:[#allocation2 + $0xc2] sm:$0xff] }
 0x151   : > { %v750_v2 = vmax.f32 %v716_v58, 0.0  ;;  %v996_v55 = vadd.f32 %v964_v57, %v864_v56  ;;  %v1164_v46 = vmul.f32 %v3415_v40, %v3099_v32  ;;  %v1363_v0 = vmul.f32 %v3395_v9, %v3093_v26 }
 0x152   : > { %v1764_v60 = vmax.f32 %v1732_v44, 0.0  ;;  %v1595_v33 = vadd.f32 %v1563_v31, %v1495_v47  ;;  %v1295_v63 = vadd.f32 %v1263_v50, %v1195_v49  ;;  %v1464_v62 = vmul.f32 %v3108_v48, %v3446_v51  ;;  %v3492_v49 = vld [vmem:[#allocation2 + $0xc8] sm:$0xff] }
 0x153   : > { %v1564_v16 = vmul.f32 %v3101_v35, %v3448_v61  ;;  %v782_v5 = vmin.f32 %v750_v2, 6.0  ;;  %v1096_v6 = vadd.f32 %v1064_v10, %v996_v55  ;;  %v1264_v3 = vmul.f32 %v3417_v18, %v3091_v25  ;;  %v3494_v50 = vld [vmem:[#allocation2 + $0xc9] sm:$0xff] }
 0x154   : > { %v1796_v11 = vmin.f32 %v1764_v60, 6.0  ;;  %v1695_v13 = vadd.f32 %v1663_v39, %v1595_v33  ;;  %v1395_v12 = vadd.f32 %v1363_v0, %v1295_v63  ;;  %v711_v15 = vadd.f32 %v3057_v45, %v710_v1 }
 0x155   : > { %815 = vst.msk [vmem:[#allocation2 + $0x189] sm:$0xff] %vm313_vm1, %v782_v5  ;;  %v1196_v17 = vadd.f32 %v1164_v46, %v1096_v6  ;;  %v865_v20 = vmul.f32 %v3386_v42, %v3066_v52  ;;  %v965_v21 = vmul.f32 %v3388_v43, %v3068_v53  ;;  %v1364_v7 = vmul.f32 %v3428_v34, %v3093_v26 }
 0x156   : > { %2567 = vmatmul.mubr.msk.f32.gmra.mxu1 %vm313_vm1, %v1796_v11  ;;  %v1733_v19 = vadd.f32 %v3169_v59, %v1695_v13  ;;  %v1496_v24 = vadd.f32 %v1464_v62, %v1395_v12  ;;  %v1065_v23 = vmul.f32 %v3395_v9, %v3074_v4  ;;  %v749_v42 = vmax.f32 %v711_v15, 0.0  ;;  %v1630_v11 = vld [vmem:[#allocation2 + $0xca] sm:$0xff]  ;;  %v3513_v13 = vld [vmem:[#allocation2 + $0xd8] sm:$0xff] }
 0x157   : > { %v1296_v45 = vadd.f32 %v1264_v3, %v1196_v17  ;;  %v997_v8 = vadd.f32 %v965_v21, %v865_v20  ;;  %v1165_v43 = vmul.f32 %v3446_v51, %v3099_v32  ;;  %v1664_v31 = vmul.f32 %v3105_v41, %v1628_v14  ;;  %v3515_v12 = vld [vmem:[#allocation2 + $0xd9] sm:$0xff] }
 0x158   : > { %v1765_v29 = vmax.f32 %v1733_v19, 0.0  ;;  %v1596_v30 = vadd.f32 %v1564_v16, %v1496_v24  ;;  %v1465_v28 = vmul.f32 %v3108_v48, %v3472_v22  ;;  %v781_v38 = vmin.f32 %v749_v42, 6.0 }
 0x159   : > { %v1396_v36 = vadd.f32 %v1364_v7, %v1296_v45  ;;  %v1097_v9 = vadd.f32 %v1065_v23, %v997_v8  ;;  %v1565_v58 = vmul.f32 %v3101_v35, %v3476_v27  ;;  %v866_v56 = vmul.f32 %v3415_v40, %v3066_v52  ;;  %v3525_v7 = vld [vmem:[#allocation2 + $0xda] sm:$0xff] }
 0x15a   : > { %v1797_v54 = vmin.f32 %v1765_v29, 6.0  ;;  %v1696_v39 = vadd.f32 %v1664_v31, %v1596_v30  ;;  %814 = vst.msk [vmem:[#allocation2 + $0x181] sm:$0xff] %vm313_vm1, %v781_v38  ;;  %v1265_v47 = vmul.f32 %v3448_v61, %v3091_v25  ;;  %v966_v2 = vmul.f32 %v3417_v18, %v3068_v53 }
 0x15b   : > { %v1497_v57 = vadd.f32 %v1465_v28, %v1396_v36  ;;  %v1197_v44 = vadd.f32 %v1165_v43, %v1097_v9  ;;  %v1665_v40 = vmul.f32 %v3105_v41, %v3483_v37  ;;  %v1365_v10 = vmul.f32 %v1628_v14, %v3093_v26  ;;  %v3539_v28 = vld [vmem:[#allocation2 + $0xe0] sm:$0xff] }
 0x15c   : > { %2569 = vmatprep.mubr.msk.f32.mxu1 %vm313_vm1, %v1797_v54  ;;  %v1734_v55 = vadd.f32 %v3169_v59, %v1696_v39  ;;  %v1066_v46 = vmul.f32 %v3428_v34, %v3074_v4  ;;  %v998_v63 = vadd.f32 %v966_v2, %v866_v56  ;;  %v1166_v0 = vmul.f32 %v3472_v22, %v3099_v32 }
 0x15d   : > { %v1597_v60 = vadd.f32 %v1565_v58, %v1497_v57  ;;  %v1297_v33 = vadd.f32 %v1265_v47, %v1197_v44  ;;  %v1466_v18 = vmul.f32 %v3108_v48, %v3492_v49  ;;  %v1566_v62 = vmul.f32 %v3101_v35, %v3494_v50  ;;  %v3545_v57 = vld [vmem:[#allocation2 + $0xe1] sm:$0xff] }
 0x15e   : > { %v1766_v1 = vmax.f32 %v1734_v55, 0.0  ;;  %v867_v16 = vmul.f32 %v3446_v51, %v3066_v52  ;;  %v1098_v34 = vadd.f32 %v1066_v46, %v998_v63  ;;  %v967_v3 = vmul.f32 %v3448_v61, %v3068_v53 }
 0x15f   : > { %v1697_v5 = vadd.f32 %v1665_v40, %v1597_v60  ;;  %v1397_v6 = vadd.f32 %v1365_v10, %v1297_v33  ;;  %v1266_v15 = vmul.f32 %v3476_v27, %v3091_v25  ;;  %v1067_v20 = vmul.f32 %v1628_v14, %v3074_v4  ;;  %v3558_v60 = vld [vmem:[#allocation2 + $0xe2] sm:$0xff] }
 0x160   : > { %v1798_v17 = vmin.f32 %v1766_v1, 6.0  ;;  %v1167_v51 = vmul.f32 %v3492_v49, %v3099_v32  ;;  %v1198_v24 = vadd.f32 %v1166_v0, %v1098_v34  ;;  %v999_v23 = vadd.f32 %v967_v3, %v867_v16  ;;  %v3566_v16 = vld [vmem:[#allocation2 + $0xf0] sm:$0xff] }
 0x161   : > { %v1735_v21 = vadd.f32 %v3169_v59, %v1697_v5  ;;  %v1498_v19 = vadd.f32 %v1466_v18, %v1397_v6  ;;  %v1666_v61 = vmul.f32 %v3105_v41, %v1630_v11  ;;  %v1366_v45 = vmul.f32 %v3483_v37, %v3093_v26  ;;  %v3568_v6 = vld [vmem:[#allocation2 + $0xf1] sm:$0xff] }
 0x162   : > { %2570 = vmatmul.mubr.msk.f32.gmra.mxu1 %vm313_vm1, %v1798_v17  ;;  %v1467_v14 = vmul.f32 %v3108_v48, %v3513_v13  ;;  %v1567_v42 = vmul.f32 %v3101_v35, %v3515_v12  ;;  %v1298_v29 = vadd.f32 %v1266_v15, %v1198_v24  ;;  %v1099_v30 = vadd.f32 %v1067_v20, %v999_v23 }
 0x163   : > { %v1767_v8 = vmax.f32 %v1735_v21, 0.0  ;;  %v1598_v43 = vadd.f32 %v1566_v62, %v1498_v19  ;;  %v1667_v31 = vmul.f32 %v3105_v41, %v3525_v7  ;;  %v1267_v36 = vmul.f32 %v3494_v50, %v3091_v25 }
 0x164   : > { %v868_v38 = vmul.f32 %v3472_v22, %v3066_v52  ;;  %v968_v9 = vmul.f32 %v3476_v27, %v3068_v53  ;;  %v1398_v58 = vadd.f32 %v1366_v45, %v1298_v29  ;;  %v1199_v56 = vadd.f32 %v1167_v51, %v1099_v30  ;;  %v3587_v29 = vld [vmem:[#allocation2 + $0xf8] sm:$0xff] }
 0x165   : > { %v1799_v54 = vmin.f32 %v1767_v8, 6.0  ;;  %v1698_v39 = vadd.f32 %v1666_v61, %v1598_v43  ;;  %v1367_v44 = vmul.f32 %v1630_v11, %v3093_v26  ;;  %v1068_v2 = vmul.f32 %v3483_v37, %v3074_v4 }
 0x166   : > { %v1000_v47 = vadd.f32 %v968_v9, %v868_v38  ;;  %v1168_v55 = vmul.f32 %v3513_v13, %v3099_v32  ;;  %v1499_v27 = vadd.f32 %v1467_v14, %v1398_v58  ;;  %v1299_v40 = vadd.f32 %v1267_v36, %v1199_v56  ;;  %v3593_v9 = vld [vmem:[#allocation2 + $0xf9] sm:$0xff] }
 0x167   : > { %2572 = vmatprep.mubr.msk.f32.mxu1 %vm313_vm1, %v1799_v54  ;;  %v1736_v22 = vadd.f32 %v3169_v59, %v1698_v39  ;;  %v1468_v10 = vmul.f32 %v3108_v48, %v3539_v28  ;;  %v1568_v46 = vmul.f32 %v3101_v35, %v3545_v57  ;;  %v869_v37 = vmul.f32 %v3492_v49, %v3066_v52  ;;  %v3597_v58 = vld [vmem:[#allocation2 + $0xfa] sm:$0xff] }
 0x168   : > { %v1100_v33 = vadd.f32 %v1068_v2, %v1000_v47  ;;  %v969_v63 = vmul.f32 %v3494_v50, %v3068_v53  ;;  %v1599_v1 = vadd.f32 %v1567_v42, %v1499_v27  ;;  %v1399_v18 = vadd.f32 %v1367_v44, %v1299_v40  ;;  %v1633_v42 = vld [vmem:[#allocation2 + $0xf2] sm:$0xff] }
 0x169   : > { %v1768_v0 = vmax.f32 %v1736_v22, 0.0  ;;  %v1268_v62 = vmul.f32 %v3515_v12, %v3091_v25  ;;  %v1069_v3 = vmul.f32 %v1630_v11, %v3074_v4  ;;  %v1169_v49 = vmul.f32 %v3539_v28, %v3099_v32 }
 0x16a   : > { %v1200_v5 = vadd.f32 %v1168_v55, %v1100_v33  ;;  %v1001_v34 = vadd.f32 %v969_v63, %v869_v37  ;;  %v1699_v15 = vadd.f32 %v1667_v31, %v1599_v1  ;;  %v1500_v50 = vadd.f32 %v1468_v10, %v1399_v18 }
 0x16b   : > { %v1800_v17 = vmin.f32 %v1768_v0, 6.0  ;;  %v1668_v20 = vmul.f32 %v3105_v41, %v3558_v60  ;;  %v1368_v21 = vmul.f32 %v3525_v7, %v3093_v26  ;;  %v1469_v19 = vmul.f32 %v3108_v48, %v3566_v16 }
 0x16c   : > { %v1300_v51 = vadd.f32 %v1268_v62, %v1200_v5  ;;  %v1101_v24 = vadd.f32 %v1069_v3, %v1001_v34  ;;  %v1737_v11 = vadd.f32 %v3169_v59, %v1699_v15  ;;  %v1600_v23 = vadd.f32 %v1568_v46, %v1500_v50  ;;  %v1435_v62 = vld [vmem:[#allocation2 + $0x108] sm:$0xff] }
 0x16d   : > { %2573 = vmatmul.mubr.msk.f32.gmra.mxu1 %vm313_vm1, %v1800_v17  ;;  %v1569_v61 = vmul.f32 %v3101_v35, %v3568_v6  ;;  %v870_v45 = vmul.f32 %v3513_v13, %v3066_v52  ;;  %v1269_v43 = vmul.f32 %v3545_v57, %v3091_v25  ;;  %v970_v30 = vmul.f32 %v3515_v12, %v3068_v53  ;;  %v3616_v5 = vld [vmem:[#allocation2 + $0x109] sm:$0xff] }
 0x16e   : > { %v1400_v14 = vadd.f32 %v1368_v21, %v1300_v51  ;;  %v1201_v8 = vadd.f32 %v1169_v49, %v1101_v24  ;;  %v1769_v31 = vmax.f32 %v1737_v11, 0.0  ;;  %v1700_v36 = vadd.f32 %v1668_v20, %v1600_v23  ;;  %v1635_v23 = vld [vmem:[#allocation2 + $0x10a] sm:$0xff] }
 0x16f   : > { %v1369_v38 = vmul.f32 %v3558_v60, %v3093_v26  ;;  %v1070_v13 = vmul.f32 %v3525_v7, %v3074_v4  ;;  %v1002_v56 = vadd.f32 %v970_v30, %v870_v45  ;;  %v1170_v44 = vmul.f32 %v3566_v16, %v3099_v32 }
 0x170   : > { %v1501_v54 = vadd.f32 %v1469_v19, %v1400_v14  ;;  %v1301_v39 = vadd.f32 %v1269_v43, %v1201_v8  ;;  %v1801_v47 = vmin.f32 %v1769_v31, 6.0  ;;  %v1738_v12 = vadd.f32 %v3169_v59, %v1700_v36  ;;  %v3634_v8 = vld [vmem:[#allocation2 + $0x110] sm:$0xff] }
 0x171   : > { %v1669_v2 = vmul.f32 %v3105_v41, %v1633_v42  ;;  %v1470_v55 = vmul.f32 %v3108_v48, %v3587_v29  ;;  %v1570_v7 = vmul.f32 %v3101_v35, %v3593_v9  ;;  %v1102_v40 = vadd.f32 %v1070_v13, %v1002_v56 }
 0x172   : > { %v1601_v22 = vadd.f32 %v1569_v61, %v1501_v54  ;;  %v1401_v27 = vadd.f32 %v1369_v38, %v1301_v39  ;;  %2575 = vmatprep.mubr.msk.f32.mxu1 %vm313_vm1, %v1801_v47  ;;  %v1770_v10 = vmax.f32 %v1738_v12, 0.0  ;;  %v1670_v46 = vmul.f32 %v3105_v41, %v3597_v58  ;;  %v3639_v38 = vld [vmem:[#allocation2 + $0x111] sm:$0xff] }
 0x173   : > { %v871_v33 = vmul.f32 %v3539_v28, %v3066_v52  ;;  %v971_v37 = vmul.f32 %v3545_v57, %v3068_v53  ;;  %v1202_v1 = vadd.f32 %v1170_v44, %v1102_v40  ;;  %v1270_v18 = vmul.f32 %v3568_v6, %v3091_v25 }
 0x174   : > { %v1701_v63 = vadd.f32 %v1669_v2, %v1601_v22  ;;  %v1502_v0 = vadd.f32 %v1470_v55, %v1401_v27  ;;  %v1802_v34 = vmin.f32 %v1770_v10, 6.0  ;;  %v1071_v49 = vmul.f32 %v3558_v60, %v3074_v4  ;;  %v1636_v2 = vld [vmem:[#allocation2 + $0x112] sm:$0xff] }
 0x175   : > { %v1003_v3 = vadd.f32 %v971_v37, %v871_v33  ;;  %v1171_v28 = vmul.f32 %v3587_v29, %v3099_v32  ;;  %v1302_v15 = vadd.f32 %v1270_v18, %v1202_v1  ;;  %v1370_v50 = vmul.f32 %v1633_v42, %v3093_v26  ;;  %v3657_v37 = vld [vmem:[#allocation2 + $0x121] sm:$0xff] }
 0x176   : > { %v1739_v17 = vadd.f32 %v3169_v59, %v1701_v63  ;;  %v1602_v57 = vadd.f32 %v1570_v7, %v1502_v0  ;;  %2576 = vmatmul.mubr.msk.f32.gmra.mxu1 %vm313_vm1, %v1802_v34  ;;  %v1471_v20 = vmul.f32 %v3108_v48, %v1435_v62  ;;  %v1571_v51 = vmul.f32 %v3101_v35, %v3616_v5 }
 0x177   : > { %v1103_v21 = vadd.f32 %v1071_v49, %v1003_v3  ;;  %v872_v60 = vmul.f32 %v3566_v16, %v3066_v52  ;;  %v1402_v11 = vadd.f32 %v1370_v50, %v1302_v15  ;;  %v972_v61 = vmul.f32 %v3568_v6, %v3068_v53 }
 0x178   : > { %v1771_v19 = vmax.f32 %v1739_v17, 0.0  ;;  %v1702_v24 = vadd.f32 %v1670_v46, %v1602_v57  ;;  %v1271_v14 = vmul.f32 %v3593_v9, %v3091_v25  ;;  %v1072_v43 = vmul.f32 %v1633_v42, %v3074_v4  ;;  %v3655_v46 = vld [vmem:[#allocation2 + $0x120] sm:$0xff] }
 0x179   : > { %v1203_v45 = vadd.f32 %v1171_v28, %v1103_v21  ;;  %v1172_v30 = vmul.f32 %v1435_v62, %v3099_v32  ;;  %v1503_v36 = vadd.f32 %v1471_v20, %v1402_v11  ;;  %v1004_v13 = vadd.f32 %v972_v61, %v872_v60  ;;  %v1637_v20 = vld [vmem:[#allocation2 + $0x122] sm:$0xff] }
 0x17a   : > { %v1803_v31 = vmin.f32 %v1771_v19, 6.0  ;;  %v1740_v16 = vadd.f32 %v3169_v59, %v1702_v24  ;;  %v1671_v54 = vmul.f32 %v3105_v41, %v1635_v23  ;;  %v1371_v39 = vmul.f32 %v3597_v58, %v3093_v26  ;;  %v3681_v24 = vld [vmem:[#allocation2 + $0x128] sm:$0xff] }
 0x17b   : > { %v1303_v6 = vadd.f32 %v1271_v14, %v1203_v45  ;;  %v1603_v44 = vadd.f32 %v1571_v51, %v1503_v36  ;;  %v1472_v42 = vmul.f32 %v3108_v48, %v3634_v8  ;;  %v1104_v47 = vadd.f32 %v1072_v43, %v1004_v13  ;;  %v3684_v45 = vld [vmem:[#allocation2 + $0x129] sm:$0xff] }
 0x17c   : > { %2578 = vmatprep.mubr.msk.f32.mxu1 %vm313_vm1, %v1803_v31  ;;  %v1772_v56 = vmax.f32 %v1740_v16, 0.0  ;;  %v1572_v59 = vmul.f32 %v3101_v35, %v3639_v38  ;;  %v873_v55 = vmul.f32 %v3587_v29, %v3066_v52  ;;  %v973_v22 = vmul.f32 %v3593_v9, %v3068_v53  ;;  %v3667_v9 = vld [vmem:[%s4068_s4] ss:$0 sm:$0xff] }
 0x17d   : > { %v1403_v12 = vadd.f32 %v1371_v39, %v1303_v6  ;;  %v1703_v7 = vadd.f32 %v1671_v54, %v1603_v44  ;;  %v1204_v40 = vadd.f32 %v1172_v30, %v1104_v47  ;;  %v1272_v10 = vmul.f32 %v3616_v5, %v3091_v25  ;;  %v1638_v44 = vld [vmem:[#allocation2 + $0x12a] sm:$0xff] }
 0x17e   : > { %v1804_v27 = vmin.f32 %v1772_v56, 6.0  ;;  %v1005_v63 = vadd.f32 %v973_v22, %v873_v55  ;;  %v1073_v0 = vmul.f32 %v3597_v58, %v3074_v4  ;;  %v1173_v29 = vmul.f32 %v3634_v8, %v3099_v32  ;;  %v3702_v55 = vld [vmem:[#allocation2 + $0x138] sm:$0xff] }
 0x17f   : > { %v1504_v33 = vadd.f32 %v1472_v42, %v1403_v12  ;;  %v1741_v1 = vadd.f32 %v3667_v9, %v1703_v7  ;;  %v1672_v18 = vmul.f32 %v3105_v41, %v1636_v2  ;;  %v1304_v34 = vadd.f32 %v1272_v10, %v1204_v40  ;;  %v3705_v7 = vld [vmem:[#allocation2 + $0x139] sm:$0xff] }
 0x180   : > { %2579 = vmatmul.mubr.msk.f32.gmra.mxu1 %vm313_vm1, %v1804_v27  ;;  %v1372_v3 = vmul.f32 %v1635_v23, %v3093_v26  ;;  %v1473_v58 = vmul.f32 %v3108_v48, %v3655_v46  ;;  %v1105_v28 = vadd.f32 %v1073_v0, %v1005_v63  ;;  %v874_v17 = vmul.f32 %v1435_v62, %v3066_v52 }
 0x181   : > { %v1604_v49 = vadd.f32 %v1572_v59, %v1504_v33  ;;  %v1773_v57 = vmax.f32 %v1741_v1, 0.0  ;;  %v1573_v50 = vmul.f32 %v3101_v35, %v3657_v37  ;;  %v974_v51 = vmul.f32 %v3616_v5, %v3068_v53 }
 0x182   : > { %v1404_v15 = vadd.f32 %v1372_v3, %v1304_v34  ;;  %v1205_v60 = vadd.f32 %v1173_v29, %v1105_v28  ;;  %v1273_v19 = vmul.f32 %v3639_v38, %v3091_v25  ;;  %v1074_v11 = vmul.f32 %v1635_v23, %v3074_v4 }
 0x183   : > { %v1704_v21 = vadd.f32 %v1672_v18, %v1604_v49  ;;  %v1805_v61 = vmin.f32 %v1773_v57, 6.0  ;;  %v1006_v14 = vadd.f32 %v974_v51, %v874_v17  ;;  %v1174_v43 = vmul.f32 %v3655_v46, %v3099_v32 }
 0x184   : > { %v1505_v62 = vadd.f32 %v1473_v58, %v1404_v15  ;;  %v1673_v5 = vmul.f32 %v3105_v41, %v1637_v20  ;;  %v1305_v31 = vadd.f32 %v1273_v19, %v1205_v60  ;;  %v1373_v16 = vmul.f32 %v1636_v2, %v3093_v26  ;;  %v1639_v58 = vld [vmem:[#allocation2 + $0x13a] sm:$0xff] }
 0x185   : > { %v1742_v30 = vadd.f32 %v3667_v9, %v1704_v21  ;;  %2581 = vmatprep.mubr.msk.f32.mxu1 %vm313_vm1, %v1805_v61  ;;  %v1474_v23 = vmul.f32 %v3108_v48, %v3681_v24  ;;  %v1106_v13 = vadd.f32 %v1074_v11, %v1006_v14  ;;  %v875_v54 = vmul.f32 %v3634_v8, %v3066_v52  ;;  %v3726_v60 = vld [vmem:[#allocation2 + $0x141] sm:$0xff] }
 0x186   : > { %v1605_v36 = vadd.f32 %v1573_v50, %v1505_v62  ;;  %v1405_v39 = vadd.f32 %v1373_v16, %v1305_v31  ;;  %v1574_v56 = vmul.f32 %v3101_v35, %v3684_v45  ;;  %v975_v42 = vmul.f32 %v3639_v38, %v3068_v53  ;;  %v3723_v50 = vld [vmem:[#allocation2 + $0x140] sm:$0xff] }
 0x187   : > { %v1774_v6 = vmax.f32 %v1742_v30, 0.0  ;;  %v1206_v12 = vadd.f32 %v1174_v43, %v1106_v13  ;;  %v1274_v59 = vmul.f32 %v3657_v37, %v3091_v25  ;;  %v1075_v22 = vmul.f32 %v1636_v2, %v3074_v4 }
 0x188   : > { %v1705_v47 = vadd.f32 %v1673_v5, %v1605_v36  ;;  %v1506_v8 = vadd.f32 %v1474_v23, %v1405_v39  ;;  %v1007_v40 = vadd.f32 %v975_v42, %v875_v54  ;;  %v1175_v10 = vmul.f32 %v3681_v24, %v3099_v32  ;;  %v1640_v23 = vld [vmem:[#allocation2 + $0x142] sm:$0xff] }
 0x189   : > { %v1806_v27 = vmin.f32 %v1774_v6, 6.0  ;;  %v1674_v38 = vmul.f32 %v3105_v41, %v1638_v44  ;;  %v1306_v63 = vadd.f32 %v1274_v59, %v1206_v12  ;;  %v1374_v0 = vmul.f32 %v1637_v20, %v3093_v26  ;;  %v3747_v12 = vld [vmem:[#allocation2 + $0x151] sm:$0xff] }
 0x18a   : > { %v1743_v33 = vadd.f32 %v3667_v9, %v1705_v47  ;;  %v1606_v29 = vadd.f32 %v1574_v56, %v1506_v8  ;;  %v1475_v2 = vmul.f32 %v3108_v48, %v3702_v55  ;;  %v1107_v1 = vadd.f32 %v1075_v22, %v1007_v40  ;;  %v3744_v56 = vld [vmem:[#allocation2 + $0x150] sm:$0xff] }
 0x18b   : > { %2582 = vmatmul.mubr.msk.f32.gmra.mxu1 %vm313_vm1, %v1806_v27  ;;  %v876_v18 = vmul.f32 %v3655_v46, %v3066_v52  ;;  %v1406_v3 = vadd.f32 %v1374_v0, %v1306_v63  ;;  %v1575_v49 = vmul.f32 %v3101_v35, %v3705_v7  ;;  %v976_v28 = vmul.f32 %v3657_v37, %v3068_v53 }
 0x18c   : > { %v1775_v34 = vmax.f32 %v1743_v33, 0.0  ;;  %v1706_v17 = vadd.f32 %v1674_v38, %v1606_v29  ;;  %v1207_v57 = vadd.f32 %v1175_v10, %v1107_v1  ;;  %v1275_v15 = vmul.f32 %v3684_v45, %v3091_v25 }
 0x18d   : > { %v1076_v51 = vmul.f32 %v1637_v20, %v3074_v4  ;;  %v1507_v46 = vadd.f32 %v1475_v2, %v1406_v3  ;;  %v1008_v19 = vadd.f32 %v976_v28, %v876_v18  ;;  %v1176_v11 = vmul.f32 %v3702_v55, %v3099_v32  ;;  %v1641_v2 = vld [vmem:[#allocation2 + $0x152] sm:$0xff] }
 0x18e   : > { %v1807_v21 = vmin.f32 %v1775_v34, 6.0  ;;  %v1744_v61 = vadd.f32 %v3667_v9, %v1706_v17  ;;  %v1675_v37 = vmul.f32 %v3105_v41, %v1639_v58  ;;  %v1307_v62 = vadd.f32 %v1275_v15, %v1207_v57  ;;  %v3768_v57 = vld [vmem:[#allocation2 + $0x159] sm:$0xff] }
 0x18f   : > { %v1375_v14 = vmul.f32 %v1638_v44, %v3093_v26  ;;  %v1607_v43 = vadd.f32 %v1575_v49, %v1507_v46  ;;  %v1476_v20 = vmul.f32 %v3108_v48, %v3723_v50  ;;  %v1108_v30 = vadd.f32 %v1076_v51, %v1008_v19  ;;  %v3765_v49 = vld [vmem:[#allocation2 + $0x158] sm:$0xff] }
 0x190   : > { %2584 = vmatprep.mubr.msk.f32.mxu1 %vm313_vm1, %v1807_v21  ;;  %v877_v5 = vmul.f32 %v3681_v24, %v3066_v52  ;;  %v1776_v31 = vmax.f32 %v1744_v61, 0.0  ;;  %v1576_v36 = vmul.f32 %v3101_v35, %v3726_v60  ;;  %v977_v13 = vmul.f32 %v3684_v45, %v3068_v53 }
 0x191   : > { %v1407_v16 = vadd.f32 %v1375_v14, %v1307_v62  ;;  %v1707_v54 = vadd.f32 %v1675_v37, %v1607_v43  ;;  %v1208_v6 = vadd.f32 %v1176_v11, %v1108_v30  ;;  %v1276_v39 = vmul.f32 %v3705_v7, %v3091_v25 }
 0x192   : > { %v1077_v42 = vmul.f32 %v1638_v44, %v3074_v4  ;;  %v1808_v47 = vmin.f32 %v1776_v31, 6.0  ;;  %v1009_v59 = vadd.f32 %v977_v13, %v877_v5  ;;  %v1177_v22 = vmul.f32 %v3723_v50, %v3099_v32 }
 0x193   : > { %v1508_v24 = vadd.f32 %v1476_v20, %v1407_v16  ;;  %v1745_v27 = vadd.f32 %v3667_v9, %v1707_v54  ;;  %v1676_v45 = vmul.f32 %v3105_v41, %v1640_v23  ;;  %v1308_v8 = vadd.f32 %v1276_v39, %v1208_v6  ;;  %v1642_v20 = vld [vmem:[#allocation2 + $0x15a] sm:$0xff]  ;;  %v3789_v6 = vld [vmem:[#allocation2 + $0x169] sm:$0xff] }
 0x194   : > { %v1376_v40 = vmul.f32 %v1639_v58, %v3093_v26  ;;  %2585 = vmatmul.mubr.msk.f32.gmra.mxu1 %vm313_vm1, %v1808_v47  ;;  %v1477_v44 = vmul.f32 %v3108_v48, %v3744_v56  ;;  %v1109_v33 = vadd.f32 %v1077_v42, %v1009_v59  ;;  %v878_v38 = vmul.f32 %v3702_v55, %v3066_v52 }
 0x195   : > { %v1608_v10 = vadd.f32 %v1576_v36, %v1508_v24  ;;  %v1777_v63 = vmax.f32 %v1745_v27, 0.0  ;;  %v1577_v29 = vmul.f32 %v3101_v35, %v3747_v12  ;;  %v978_v1 = vmul.f32 %v3705_v7, %v3068_v53  ;;  %v3786_v36 = vld [vmem:[#allocation2 + $0x168] sm:$0xff] }
 0x196   : > { %v1408_v0 = vadd.f32 %v1376_v40, %v1308_v8  ;;  %v1209_v34 = vadd.f32 %v1177_v22, %v1109_v33  ;;  %v1277_v3 = vmul.f32 %v3726_v60, %v3091_v25  ;;  %v1078_v28 = vmul.f32 %v1639_v58, %v3074_v4 }
 0x197   : > { %v1708_v18 = vadd.f32 %v1676_v45, %v1608_v10  ;;  %v1809_v17 = vmin.f32 %v1777_v63, 6.0  ;;  %v1010_v15 = vadd.f32 %v978_v1, %v878_v38  ;;  %v1178_v51 = vmul.f32 %v3744_v56, %v3099_v32 }
 0x198   : > { %v1509_v55 = vadd.f32 %v1477_v44, %v1408_v0  ;;  %v1677_v7 = vmul.f32 %v3105_v41, %v1641_v2  ;;  %v1309_v46 = vadd.f32 %v1277_v3, %v1209_v34  ;;  %v1377_v19 = vmul.f32 %v1640_v23, %v3093_v26  ;;  %v1643_v44 = vld [vmem:[#allocation2 + $0x16a] sm:$0xff] }
 0x199   : > { %v1746_v21 = vadd.f32 %v3667_v9, %v1708_v18  ;;  %2587 = vmatprep.mubr.msk.f32.mxu1 %vm313_vm1, %v1809_v17  ;;  %v1478_v58 = vmul.f32 %v3108_v48, %v3765_v49  ;;  %v1110_v61 = vadd.f32 %v1078_v28, %v1010_v15  ;;  %v879_v37 = vmul.f32 %v3723_v50, %v3066_v52  ;;  %v3810_v34 = vld [vmem:[#allocation2 + $0x171] sm:$0xff] }
 0x19a   : > { %v1609_v11 = vadd.f32 %v1577_v29, %v1509_v55  ;;  %v1409_v14 = vadd.f32 %v1377_v19, %v1309_v46  ;;  %v1578_v43 = vmul.f32 %v3101_v35, %v3768_v57  ;;  %v979_v30 = vmul.f32 %v3726_v60, %v3068_v53  ;;  %v3807_v29 = vld [vmem:[#allocation2 + $0x170] sm:$0xff] }
 0x19b   : > { %v1778_v62 = vmax.f32 %v1746_v21, 0.0  ;;  %v1210_v31 = vadd.f32 %v1178_v51, %v1110_v61  ;;  %v1278_v16 = vmul.f32 %v3747_v12, %v3091_v25  ;;  %v1079_v13 = vmul.f32 %v1640_v23, %v3074_v4 }
 0x19c   : > { %v1709_v5 = vadd.f32 %v1677_v7, %v1609_v11  ;;  %v1510_v50 = vadd.f32 %v1478_v58, %v1409_v14  ;;  %v1011_v39 = vadd.f32 %v979_v30, %v879_v37  ;;  %v1179_v42 = vmul.f32 %v3765_v49, %v3099_v32  ;;  %v1644_v58 = vld [vmem:[#allocation2 + $0x172] sm:$0xff] }
 0x19d   : > { %v1810_v54 = vmin.f32 %v1778_v62, 6.0  ;;  %v1678_v60 = vmul.f32 %v3105_v41, %v1642_v20  ;;  %v1310_v24 = vadd.f32 %v1278_v16, %v1210_v31  ;;  %v1378_v59 = vmul.f32 %v1641_v2, %v3093_v26 }
 0x19e   : > { %v1747_v47 = vadd.f32 %v3667_v9, %v1709_v5  ;;  %v1610_v22 = vadd.f32 %v1578_v43, %v1510_v50  ;;  %v1479_v23 = vmul.f32 %v3108_v48, %v3786_v36  ;;  %v1111_v27 = vadd.f32 %v1079_v13, %v1011_v39  ;;  %v1445_v43 = vld [vmem:[#allocation2 + $0x180] sm:$0xff] }
 0x19f   : > { %2588 = vmatmul.mubr.msk.f32.gmra.mxu1 %vm313_vm1, %v1810_v54  ;;  %v880_v45 = vmul.f32 %v3744_v56, %v3066_v52  ;;  %v1410_v40 = vadd.f32 %v1378_v59, %v1310_v24  ;;  %v1579_v10 = vmul.f32 %v3101_v35, %v3789_v6  ;;  %v980_v33 = vmul.f32 %v3747_v12, %v3068_v53 }
 0x1a0   : > { %v1779_v8 = vmax.f32 %v1747_v47, 0.0  ;;  %v1710_v38 = vadd.f32 %v1678_v60, %v1610_v22  ;;  %v1211_v63 = vadd.f32 %v1179_v42, %v1111_v27  ;;  %v1279_v0 = vmul.f32 %v3768_v57, %v3091_v25 }
 0x1a1   : > { %v1080_v1 = vmul.f32 %v1641_v2, %v3074_v4  ;;  %v1511_v56 = vadd.f32 %v1479_v23, %v1410_v40  ;;  %v1012_v3 = vadd.f32 %v980_v33, %v880_v45  ;;  %v1180_v28 = vmul.f32 %v3786_v36, %v3099_v32  ;;  %v1645_v23 = vld [vmem:[#allocation2 + $0x182] sm:$0xff] }
 0x1a2   : > { %v1811_v18 = vmin.f32 %v1779_v8, 6.0  ;;  %v1748_v17 = vadd.f32 %v3667_v9, %v1710_v38  ;;  %v1679_v12 = vmul.f32 %v3105_v41, %v1643_v44  ;;  %v1311_v55 = vadd.f32 %v1279_v0, %v1211_v63  ;;  %v1546_v0 = vld [vmem:[#allocation2 + $0x189] sm:$0xff] }
 0x1a3   : > { %v1379_v15 = vmul.f32 %v1642_v20, %v3093_v26  ;;  %v1611_v51 = vadd.f32 %v1579_v10, %v1511_v56  ;;  %v1480_v2 = vmul.f32 %v3108_v48, %v3807_v29  ;;  %v1112_v21 = vadd.f32 %v1080_v1, %v1012_v3  ;;  %v1446_v10 = vld [vmem:[#allocation2 + $0x188] sm:$0xff] }
 0x1a4   : > { %2590 = vmatprep.mubr.msk.f32.mxu1 %vm313_vm1, %v1811_v18  ;;  %v881_v7 = vmul.f32 %v3765_v49, %v3066_v52  ;;  %v1780_v46 = vmax.f32 %v1748_v17, 0.0  ;;  %v1580_v11 = vmul.f32 %v3101_v35, %v3810_v34  ;;  %v981_v61 = vmul.f32 %v3768_v57, %v3068_v53  ;;  %v1545_v49 = vld [vmem:[#allocation2 + $0x181] sm:$0xff] }
 0x1a5   : > { %v1411_v19 = vadd.f32 %v1379_v15, %v1311_v55  ;;  %v1711_v37 = vadd.f32 %v1679_v12, %v1611_v51  ;;  %v1212_v62 = vadd.f32 %v1180_v28, %v1112_v21  ;;  %v1280_v14 = vmul.f32 %v3789_v6, %v3091_v25 }
 0x1a6   : > { %v1081_v30 = vmul.f32 %v1642_v20, %v3074_v4  ;;  %v1812_v5 = vmin.f32 %v1780_v46, 6.0  ;;  %v1013_v16 = vadd.f32 %v981_v61, %v881_v7  ;;  %v1181_v13 = vmul.f32 %v3807_v29, %v3099_v32  ;;  %v1646_v46 = vld [vmem:[#allocation2 + $0x18a] sm:$0xff] }
 0x1a7   : > { %v1512_v31 = vadd.f32 %v1480_v2, %v1411_v19  ;;  %v1749_v54 = vadd.f32 %v3667_v9, %v1711_v37  ;;  %v1680_v50 = vmul.f32 %v3105_v41, %v1644_v58  ;;  %v1312_v57 = vadd.f32 %v1280_v14, %v1212_v62  ;;  %v1447_v2 = vld [vmem:[#allocation2 + $0x198] sm:$0xff] }
 0x1a8   : > { %v1380_v39 = vmul.f32 %v1643_v44, %v3093_v26  ;;  %2591 = vmatmul.mubr.msk.f32.gmra.mxu1 %vm313_vm1, %v1812_v5  ;;  %v1481_v47 = vmul.f32 %v3108_v48, %v1445_v43  ;;  %v1113_v20 = vadd.f32 %v1081_v30, %v1013_v16  ;;  %v882_v60 = vmul.f32 %v3786_v36, %v3066_v52  ;;  %v1547_v14 = vld [vmem:[#allocation2 + $0x199] sm:$0xff] }
 0x1a9   : > { %v1612_v42 = vadd.f32 %v1580_v11, %v1512_v31  ;;  %v1781_v24 = vmax.f32 %v1749_v54, 0.0  ;;  %v1581_v22 = vmul.f32 %v3101_v35, %v1545_v49  ;;  %v982_v27 = vmul.f32 %v3789_v6, %v3068_v53  ;;  %v1448_v54 = vld [vmem:[#allocation2 + $0x1a0] sm:$0xff] }
 0x1aa   : > { %v1412_v59 = vadd.f32 %v1380_v39, %v1312_v57  ;;  %v1213_v8 = vadd.f32 %v1181_v13, %v1113_v20  ;;  %v1281_v40 = vmul.f32 %v3810_v34, %v3091_v25  ;;  %v1082_v33 = vmul.f32 %v1643_v44, %v3074_v4  ;;  %v1548_v20 = vld [vmem:[#allocation2 + $0x1a1] sm:$0xff] }
 0x1ab   : > { %v1712_v45 = vadd.f32 %v1680_v50, %v1612_v42  ;;  %v1813_v38 = vmin.f32 %v1781_v24, 6.0  ;;  %v1014_v36 = vadd.f32 %v982_v27, %v882_v60  ;;  %v1182_v1 = vmul.f32 %v1445_v43, %v3099_v32  ;;  %v1648_v27 = vld [vmem:[#allocation2 + $0x1a2] sm:$0xff] }
 0x1ac   : > { %v1513_v63 = vadd.f32 %v1481_v47, %v1412_v59  ;;  %v1681_v56 = vmul.f32 %v3105_v41, %v1645_v23  ;;  %v1313_v3 = vadd.f32 %v1281_v40, %v1213_v8  ;;  %v1381_v6 = vmul.f32 %v1644_v58, %v3093_v26 }
 0x1ad   : > { %v1750_v18 = vadd.f32 %v3667_v9, %v1712_v45  ;;  %2593 = vmatprep.mubr.msk.f32.mxu1 %vm313_vm1, %v1813_v38  ;;  %v1482_v17 = vmul.f32 %v3108_v48, %v1446_v10  ;;  %v1114_v12 = vadd.f32 %v1082_v33, %v1014_v36  ;;  %v883_v44 = vmul.f32 %v3807_v29, %v3066_v52 }
 0x1ae   : > { %v1613_v28 = vadd.f32 %v1581_v22, %v1513_v63  ;;  %v1413_v15 = vadd.f32 %v1381_v6, %v1313_v3  ;;  %v1582_v51 = vmul.f32 %v3101_v35, %v1546_v0  ;;  %v983_v21 = vmul.f32 %v3810_v34, %v3068_v53  ;;  %v2147_v3 = vld [vmem:[%s2914_s15 + $0x8] sm:$0xff] }
 0x1af   : > { %v1782_v55 = vmax.f32 %v1750_v18, 0.0  ;;  %v1214_v19 = vadd.f32 %v1182_v1, %v1114_v12  ;;  %v1282_v11 = vmul.f32 %v1545_v49, %v3091_v25  ;;  %v1083_v61 = vmul.f32 %v1644_v58, %v3074_v4  ;;  %v1647_v49 = vld [vmem:[#allocation2 + $0x19a] sm:$0xff] }
 0x1b0   : > { %v1713_v7 = vadd.f32 %v1681_v56, %v1613_v28  ;;  %v1514_v62 = vadd.f32 %v1482_v17, %v1413_v15  ;;  %v1015_v43 = vadd.f32 %v983_v21, %v883_v44  ;;  %v1183_v52 = vmul.f32 %v1446_v10, %v3099_v32  ;;  %v2146_v17 = vld [vmem:[%s2914_s15] sm:$0xff]  ;;  %v2149_v15 = vld [vmem:[%s2914_s15 + $0x18] sm:$0xff]  ;;  %v2148_v21 = vld [vmem:[%s2914_s15 + $0x10] sm:$0xff] }
 0x1b1   : > { %v1814_v37 = vmin.f32 %v1782_v55, 6.0  ;;  %v1314_v30 = vadd.f32 %v1282_v11, %v1214_v19  ;;  %v1382_v5 = vmul.f32 %v1645_v23, %v3093_v26  ;;  %v1483_v53 = vmul.f32 %v3108_v48, %v1447_v2 }
 0x1b2   : > { %v1751_v29 = vadd.f32 %v3667_v9, %v1713_v7  ;;  %v1614_v34 = vadd.f32 %v1582_v51, %v1514_v62  ;;  %v1682_v31 = vmul.f32 %v3105_v41, %v1646_v46  ;;  %v1115_v4 = vadd.f32 %v1083_v61, %v1015_v43  ;;  %v2151_v61 = vld [vmem:[%s2914_s15 + $0x28] sm:$0xff] }
 0x1b3   : > { %2594 = vmatmul.mubr.msk.f32.gmra.mxu1 %vm313_vm1, %v1814_v37  ;;  %v1414_v16 = vadd.f32 %v1382_v5, %v1314_v30  ;;  %v1583_v13 = vmul.f32 %v3101_v35, %v1547_v14  ;;  %v1283_v57 = vmul.f32 %v1546_v0, %v3091_v25  ;;  %v1683_v47 = vmul.f32 %v3105_v41, %v1647_v49  ;;  %v2150_v14 = vld [vmem:[%s2914_s15 + $0x20] sm:$0xff]  ;;  %v2153_v5 = vld [vmem:[%s2914_s15 + $0x38] sm:$0xff] }
 0x1b4   : > { %v1783_v58 = vmax.f32 %v1751_v29, 0.0  ;;  %v1714_v32 = vadd.f32 %v1682_v31, %v1614_v34  ;;  %v1215_v50 = vadd.f32 %v1183_v52, %v1115_v4  ;;  %v1383_v59 = vmul.f32 %v1646_v46, %v3093_v26  ;;  %v2152_v31 = vld [vmem:[%s2914_s15 + $0x30] sm:$0xff] }
 0x1b5   : > { %v1515_v42 = vadd.f32 %v1483_v53, %v1414_v16  ;;  %v1484_v22 = vmul.f32 %v3108_v48, %v1448_v54  ;;  %v1584_v25 = vmul.f32 %v3101_v35, %v1548_v20  ;;  %v1684_v38 = vmul.f32 %v3105_v41, %v1648_v27  ;;  %v3880_v41 = vld [vmem:[%s4070_s6] ss:$0 sm:$0xff]  ;;  %v2157_v20 = vld [vmem:[%s2914_s15 + $0x58] sm:$0xff] }
 0x1b6   : > { %v1815_v39 = vmin.f32 %v1783_v58, 6.0  ;;  %v1752_v60 = vadd.f32 %v3667_v9, %v1714_v32  ;;  %v1315_v24 = vadd.f32 %v1283_v57, %v1215_v50  ;;  %v2154_v50 = vld [vmem:[%s2914_s15 + $0x40] sm:$0xff] }
 0x1b7   : > { %v1615_v23 = vadd.f32 %v1583_v13, %v1515_v42  ;;  %v2155_v13 = vld [vmem:[%s2914_s15 + $0x48] sm:$0xff] }
 0x1b8   : > { %2596 = vmatprep.mubr.msk.f32.mxu1 %vm313_vm1, %v1815_v39  ;;  %v1784_v45 = vmax.f32 %v1752_v60, 0.0  ;;  %v1415_v8 = vadd.f32 %v1383_v59, %v1315_v24  ;;  %v2156_v59 = vld [vmem:[%s2914_s15 + $0x50] sm:$0xff] }
 0x1b9   : > { %v1715_v40 = vadd.f32 %v1683_v47, %v1615_v23 }
 0x1ba   : > { %v1816_v10 = vmin.f32 %v1784_v45, 6.0  ;;  %v1516_v33 = vadd.f32 %v1484_v22, %v1415_v8  ;;  %v2159_v8 = vld [vmem:[%s2914_s15 + $0x68] sm:$0xff] }
 0x1bb   : > { %v1753_v63 = vadd.f32 %v3667_v9, %v1715_v40 }
 0x1bc   : > { %2597 = vmatmul.mubr.msk.f32.gmra.mxu1 %vm313_vm1, %v1816_v10  ;;  %v1616_v26 = vadd.f32 %v1584_v25, %v1516_v33  ;;  %v2158_v10 = vld [vmem:[%s2914_s15 + $0x60] sm:$0xff] }
 0x1bd   : > { %v1785_v48 = vmax.f32 %v1753_v63, 0.0 }
 0x1be   : > { %v1716_v0 = vadd.f32 %v1684_v38, %v1616_v26 }
 0x1bf   : > { %v1817_v36 = vmin.f32 %v1785_v48, 6.0  ;;  %v2161_v48 = vld [vmem:[%s2914_s15 + $0x78] sm:$0xff] }
 0x1c0   : > { %v1754_v1 = vadd.f32 %v3667_v9, %v1716_v0 }
 0x1c1   : > { %2599 = vmatprep.mubr.msk.f32.mxu1 %vm313_vm1, %v1817_v36 }
 0x1c2   : > { %v1786_v35 = vmax.f32 %v1754_v1, 0.0  ;;  %v2160_v1 = vld [vmem:[%s2914_s15 + $0x70] sm:$0xff] }
 0x1c4   : > { %v1818_v18 = vmin.f32 %v1786_v35, 6.0 }
 0x1c6   : > { %2600 = vmatmul.mubr.msk.f32.gmra.mxu1 %vm313_vm1, %v1818_v18 }
 0x1e0   : > { %v2556_v56 = vpop.f32.mrf.mxu0 }
 0x1e1   : > { %v1993_v6 = vadd.f32 %v2556_v56, %v3880_v41 }
 0x1e2   : > { %v1987_v28 = vpop.f32.mrf.mxu0 }
 0x1e3   : > { %v2179_v9 = vadd.f32 %v2147_v3, %v1993_v6  ;;  %v1988_v12 = vadd.f32 %v3880_v41, %v1987_v28  ;;  %v2163_v6 = vld [vmem:[%s2914_s15 + $0x88] sm:$0xff] }
 0x1e5   : > { %2211 = vst.msk [vmem:[%s3888_s22 + $0x8] sm:$0xff] %vm397_vm0, %v2179_v9  ;;  %v2178_v44 = vadd.f32 %v2146_v17, %v1988_v12  ;;  %v2162_v9 = vld [vmem:[%s2914_s15 + $0x80] sm:$0xff] }
 0x1e7   : > { %2210 = vst.msk [vmem:[%s3888_s22] sm:$0xff] %vm397_vm0, %v2178_v44 }
 0x1f1   : > { %v2559_v55 = vpop.f32.mrf.mxu1 }
 0x1f2   : > { %v2003_v51 = vadd.f32 %v2559_v55, %v3880_v41 }
 0x1f3   : > { %v1997_v2 = vpop.f32.mrf.mxu1 }
 0x1f4   : > { %v2181_v7 = vadd.f32 %v2149_v15, %v2003_v51  ;;  %v1998_v46 = vadd.f32 %v3880_v41, %v1997_v2  ;;  %v2165_v51 = vld [vmem:[%s2914_s15 + $0x98] sm:$0xff] }
 0x1f6   : > { %2213 = vst.msk [vmem:[%s3888_s22 + $0x18] sm:$0xff] %vm397_vm0, %v2181_v7  ;;  %v2180_v19 = vadd.f32 %v2148_v21, %v1998_v46  ;;  %v2164_v7 = vld [vmem:[%s2914_s15 + $0x90] sm:$0xff] }
 0x1f8   : > { %2212 = vst.msk [vmem:[%s3888_s22 + $0x10] sm:$0xff] %vm397_vm0, %v2180_v19 }
 0x200   : > { %v2562_v11 = vpop.f32.mrf.mxu1 }
 0x201   : > { %v2013_v37 = vadd.f32 %v2562_v11, %v3880_v41 }
 0x202   : > { %v2007_v62 = vpop.f32.mrf.mxu1 }
 0x203   : > { %v2183_v43 = vadd.f32 %v2151_v61, %v2013_v37  ;;  %v2008_v52 = vadd.f32 %v3880_v41, %v2007_v62  ;;  %v2167_v37 = vld [vmem:[%s2914_s15 + $0xa8] sm:$0xff] }
 0x205   : > { %2215 = vst.msk [vmem:[%s3888_s22 + $0x28] sm:$0xff] %vm397_vm0, %v2183_v43  ;;  %v2182_v29 = vadd.f32 %v2150_v14, %v2008_v52  ;;  %v2166_v43 = vld [vmem:[%s2914_s15 + $0xa0] sm:$0xff] }
 0x207   : > { %2214 = vst.msk [vmem:[%s3888_s22 + $0x20] sm:$0xff] %vm397_vm0, %v2182_v29 }
 0x20b   : > { %v2565_v30 = vpop.f32.mrf.mxu1 }
 0x20c   : > { %v2023_v53 = vadd.f32 %v2565_v30, %v3880_v41 }
 0x20d   : > { %v2017_v34 = vpop.f32.mrf.mxu1 }
 0x20e   : > { %v2185_v49 = vadd.f32 %v2153_v5, %v2023_v53  ;;  %v2018_v4 = vadd.f32 %v3880_v41, %v2017_v34  ;;  %v2169_v53 = vld [vmem:[%s2914_s15 + $0xb8] sm:$0xff] }
 0x210   : > { %2217 = vst.msk [vmem:[%s3888_s22 + $0x38] sm:$0xff] %vm397_vm0, %v2185_v49  ;;  %v2184_v58 = vadd.f32 %v2152_v31, %v2018_v4  ;;  %v2168_v49 = vld [vmem:[%s2914_s15 + $0xb0] sm:$0xff] }
 0x212   : > { %2216 = vst.msk [vmem:[%s3888_s22 + $0x30] sm:$0xff] %vm397_vm0, %v2184_v58 }
 0x216   : > { %v2568_v16 = vpop.f32.mrf.mxu1 }
 0x217   : > { %v2033_v54 = vadd.f32 %v2568_v16, %v3880_v41 }
 0x218   : > { %v2027_v32 = vpop.f32.mrf.mxu1 }
 0x219   : > { %v2187_v57 = vadd.f32 %v2155_v13, %v2033_v54  ;;  %v2028_v39 = vadd.f32 %v3880_v41, %v2027_v32  ;;  %v2171_v54 = vld [vmem:[%s2914_s15 + $0xc8] sm:$0xff] }
 0x21b   : > { %2219 = vst.msk [vmem:[%s3888_s22 + $0x48] sm:$0xff] %vm397_vm0, %v2187_v57  ;;  %v2186_v42 = vadd.f32 %v2154_v50, %v2028_v39  ;;  %v2170_v57 = vld [vmem:[%s2914_s15 + $0xc0] sm:$0xff] }
 0x21d   : > { %2218 = vst.msk [vmem:[%s3888_s22 + $0x40] sm:$0xff] %vm397_vm0, %v2186_v42 }
 0x222   : > { %v2571_v47 = vpop.f32.mrf.mxu1 }
 0x223   : > { %v2043_v60 = vadd.f32 %v2571_v47, %v3880_v41 }
 0x224   : > { %v2037_v24 = vpop.f32.mrf.mxu1 }
 0x225   : > { %v2189_v22 = vadd.f32 %v2157_v20, %v2043_v60  ;;  %v2038_v23 = vadd.f32 %v3880_v41, %v2037_v24  ;;  %v2173_v60 = vld [vmem:[%s2914_s15 + $0xd8] sm:$0xff] }
 0x227   : > { %2221 = vst.msk [vmem:[%s3888_s22 + $0x58] sm:$0xff] %vm397_vm0, %v2189_v22  ;;  %v2188_v27 = vadd.f32 %v2156_v59, %v2038_v23  ;;  %v2172_v22 = vld [vmem:[%s2914_s15 + $0xd0] sm:$0xff] }
 0x229   : > { %2220 = vst.msk [vmem:[%s3888_s22 + $0x50] sm:$0xff] %vm397_vm0, %v2188_v27 }
 0x22d   : > { %v2574_v45 = vpop.f32.mrf.mxu1 }
 0x22e   : > { %v2053_v25 = vadd.f32 %v2574_v45, %v3880_v41 }
 0x22f   : > { %v2047_v40 = vpop.f32.mrf.mxu1 }
 0x230   : > { %v2191_v33 = vadd.f32 %v2159_v8, %v2053_v25  ;;  %v2048_v38 = vadd.f32 %v3880_v41, %v2047_v40  ;;  %v2175_v25 = vld [vmem:[%s2914_s15 + $0xe8] sm:$0xff] }
 0x232   : > { %2223 = vst.msk [vmem:[%s3888_s22 + $0x68] sm:$0xff] %vm397_vm0, %v2191_v33  ;;  %v2190_v63 = vadd.f32 %v2158_v10, %v2048_v38  ;;  %v2174_v33 = vld [vmem:[%s2914_s15 + $0xe0] sm:$0xff] }
 0x234   : > { %2222 = vst.msk [vmem:[%s3888_s22 + $0x60] sm:$0xff] %vm397_vm0, %v2190_v63 }
 0x236   : > { %v2577_v26 = vpop.f32.mrf.mxu1 }
 0x237   : > { %v2063_v0 = vadd.f32 %v2577_v26, %v3880_v41 }
 0x238   : > { %v2057_v36 = vpop.f32.mrf.mxu1 }
 0x239   : > { %v2193_v35 = vadd.f32 %v2161_v48, %v2063_v0  ;;  %v2058_v18 = vadd.f32 %v3880_v41, %v2057_v36  ;;  %v2177_v0 = vld [vmem:[%s2914_s15 + $0xf8] sm:$0xff] }
 0x23b   : > { %2225 = vst.msk [vmem:[%s3888_s22 + $0x78] sm:$0xff] %vm397_vm0, %v2193_v35  ;;  %v2192_v56 = vadd.f32 %v2160_v1, %v2058_v18  ;;  %v2176_v35 = vld [vmem:[%s2914_s15 + $0xf0] sm:$0xff]  ;;  %s2698_s15 = scalar_lea.vmem %s4017_s23, 4096 }
 0x23c   : > { %p2699_p11 = scmp.ne.s32.totalorder %s4017_s23, %s2698_s15  ;;  %p2706_p7 = scmp.lt.s32.totalorder %s2704_s8, %s2698_s15 }
 0x23d   : > { %2224 = vst.msk [vmem:[%s3888_s22 + $0x70] sm:$0xff] %vm397_vm0, %v2192_v56 }
 0x23e   : > { %p2700_p13 = pnand %p2699_p11, %p4080_p12  ;;  %p2707_p8 = por %p2706_p7, %p2705_p5 }
 0x240   : > { %v2580_v3 = vpop.f32.mrf.mxu1  ;;  %p2701_p4 = pneg %p2700_p13 }
 0x241   : > { %v2073_v28 = vadd.f32 %v2580_v3, %v3880_v41 }
 0x242   : > { %v2067_v17 = vpop.f32.mrf.mxu1  ;;  %p2708_p10 = pnand %p2707_p8, %p2701_p4 }
 0x243   : > { %v2195_v12 = vadd.f32 %v2163_v6, %v2073_v28  ;;  %v2068_v44 = vadd.f32 %v3880_v41, %v2067_v17 }
 0x245   : > { %2227 = vst.msk [vmem:[%s3888_s22 + $0x88] sm:$0xff] %vm397_vm0, %v2195_v12  ;;  %v2194_v55 = vadd.f32 %v2162_v9, %v2068_v44 }
 0x247   : > { %2226 = vst.msk [vmem:[%s3888_s22 + $0x80] sm:$0xff] %vm397_vm0, %v2194_v55 }
 0x24b   : > { %v2583_v15 = vpop.f32.mrf.mxu1 }
 0x24c   : > { %v2083_v2 = vadd.f32 %v2583_v15, %v3880_v41 }
 0x24d   : > { %v2077_v21 = vpop.f32.mrf.mxu1 }
 0x24e   : > { %v2197_v46 = vadd.f32 %v2165_v51, %v2083_v2  ;;  %v2078_v19 = vadd.f32 %v3880_v41, %v2077_v21 }
 0x250   : > { %2229 = vst.msk [vmem:[%s3888_s22 + $0x98] sm:$0xff] %vm397_vm0, %v2197_v46  ;;  %v2196_v11 = vadd.f32 %v2164_v7, %v2078_v19 }
 0x252   : > { %2228 = vst.msk [vmem:[%s3888_s22 + $0x90] sm:$0xff] %vm397_vm0, %v2196_v11 }
 0x254   : > { %v2586_v61 = vpop.f32.mrf.mxu1 }
 0x255   : > { %v2093_v62 = vadd.f32 %v2586_v61, %v3880_v41 }
 0x256   : > { %v2087_v14 = vpop.f32.mrf.mxu1 }
 0x257   : > { %v2199_v52 = vadd.f32 %v2167_v37, %v2093_v62  ;;  %v2088_v29 = vadd.f32 %v3880_v41, %v2087_v14 }
 0x259   : > { %2231 = vst.msk [vmem:[%s3888_s22 + $0xa8] sm:$0xff] %vm397_vm0, %v2199_v52  ;;  %v2198_v30 = vadd.f32 %v2166_v43, %v2088_v29 }
 0x25b   : > { %2230 = vst.msk [vmem:[%s3888_s22 + $0xa0] sm:$0xff] %vm397_vm0, %v2198_v30 }
 0x25f   : > { %v2589_v5 = vpop.f32.mrf.mxu1 }
 0x260   : > { %v2103_v34 = vadd.f32 %v2589_v5, %v3880_v41 }
 0x261   : > { %v2097_v31 = vpop.f32.mrf.mxu1 }
 0x262   : > { %v2201_v4 = vadd.f32 %v2169_v53, %v2103_v34  ;;  %v2098_v58 = vadd.f32 %v3880_v41, %v2097_v31 }
 0x264   : > { %2233 = vst.msk [vmem:[%s3888_s22 + $0xb8] sm:$0xff] %vm397_vm0, %v2201_v4  ;;  %v2200_v16 = vadd.f32 %v2168_v49, %v2098_v58 }
 0x266   : > { %2232 = vst.msk [vmem:[%s3888_s22 + $0xb0] sm:$0xff] %vm397_vm0, %v2200_v16 }
 0x268   : > { %v2592_v13 = vpop.f32.mrf.mxu1 }
 0x269   : > { %v2113_v32 = vadd.f32 %v2592_v13, %v3880_v41 }
 0x26a   : > { %v2107_v50 = vpop.f32.mrf.mxu1 }
 0x26b   : > { %v2203_v39 = vadd.f32 %v2171_v54, %v2113_v32  ;;  %v2108_v42 = vadd.f32 %v3880_v41, %v2107_v50 }
 0x26d   : > { %2235 = vst.msk [vmem:[%s3888_s22 + $0xc8] sm:$0xff] %vm397_vm0, %v2203_v39  ;;  %v2202_v47 = vadd.f32 %v2170_v57, %v2108_v42 }
 0x26f   : > { %2234 = vst.msk [vmem:[%s3888_s22 + $0xc0] sm:$0xff] %vm397_vm0, %v2202_v47 }
 0x273   : > { %v2595_v20 = vpop.f32.mrf.mxu1 }
 0x274   : > { %v2123_v24 = vadd.f32 %v2595_v20, %v3880_v41 }
 0x275   : > { %v2117_v59 = vpop.f32.mrf.mxu1 }
 0x276   : > { %v2205_v23 = vadd.f32 %v2173_v60, %v2123_v24  ;;  %v2118_v27 = vadd.f32 %v3880_v41, %v2117_v59 }
 0x278   : > { %2237 = vst.msk [vmem:[%s3888_s22 + $0xd8] sm:$0xff] %vm397_vm0, %v2205_v23  ;;  %v2204_v45 = vadd.f32 %v2172_v22, %v2118_v27 }
 0x27a   : > { %2236 = vst.msk [vmem:[%s3888_s22 + $0xd0] sm:$0xff] %vm397_vm0, %v2204_v45 }
 0x27c   : > { %v2598_v8 = vpop.f32.mrf.mxu1 }
 0x27d   : > { %v2133_v40 = vadd.f32 %v2598_v8, %v3880_v41 }
 0x27e   : > { %v2127_v10 = vpop.f32.mrf.mxu1 }
 0x27f   : > { %v2207_v38 = vadd.f32 %v2175_v25, %v2133_v40  ;;  %v2128_v63 = vadd.f32 %v3880_v41, %v2127_v10 }
 0x281   : > { %2239 = vst.msk [vmem:[%s3888_s22 + $0xe8] sm:$0xff] %vm397_vm0, %v2207_v38  ;;  %v2206_v26 = vadd.f32 %v2174_v33, %v2128_v63 }
 0x283   : > { %2238 = vst.msk [vmem:[%s3888_s22 + $0xe0] sm:$0xff] %vm397_vm0, %v2206_v26 }
 0x286   : > { %v2601_v48 = vpop.f32.mrf.mxu1 }
 0x287   : > { %v2143_v36 = vadd.f32 %v2601_v48, %v3880_v41 }
 0x288   : > { %v2137_v1 = vpop.f32.mrf.mxu1 }
 0x289   : > { %v2209_v18 = vadd.f32 %v2177_v0, %v2143_v36  ;;  %v2138_v56 = vadd.f32 %v3880_v41, %v2137_v1 }
 0x28b   : > { %2241 = vst.msk [vmem:[%s3888_s22 + $0xf8] sm:$0xff] %vm397_vm0, %v2209_v18  ;;  %v2208_v3 = vadd.f32 %v2176_v35, %v2138_v56 }
 0x28d   : > { %2240 = vst.msk [vmem:[%s3888_s22 + $0xf0] sm:$0xff] %vm397_vm0, %v2208_v3 }
 0x28e   : > { %2711 = shalt.err (!%p2708_p10)
}
 0x28f   : > { %s2712_s16 = scalar_lea.hbm %s4015_s19, 4096  ;;  %s2716_s22 = scalar_lea.hbm %s4071_s7, 8192 }
 0x290   : > { %p2713_p0 = scmp.ne.s32.totalorder %s4015_s19, %s2712_s16  ;;  %p2717_p1 = scmp.lt.s32.totalorder %s4015_s19, %s4071_s7 }
 0x291   : > { %p2718_p3 = scmp.lt.s32.totalorder %s2716_s22, %s2712_s16 }
 0x292   : > { %p2714_p2 = pnand %p2713_p0, %p4080_p12 }
 0x293   : > { %p2719_p6 = por %p2718_p3, %p2717_p1 }
 0x294   : > { %p2715_p9 = pneg %p2714_p2 }
 0x296   : > { %p2720_p11 = pnand %p2719_p6, %p2715_p9 }
 0x298   : > { %2723 = shalt.err (!%p2720_p11)
}
 0x299   : > { %s2769_s12 = smov 128   ;;  %s2770_s15 = smov 8  }
 0x29a   : > { %2620 = dma.vmem_to_hbm [thread:$0]  (%p4080_p12), %s4017_s23, 4096, %s4015_s19, %s2243_s28, %s2769_s12, %s2769_s12, %s2770_s15  }
 0x29b PF: > { %s2271_s21 = sand.u32 1, %s2750_s24   ;;  %p4081_p13 = scmp.ne.s32.totalorder %s4077_s14, 0 }
 0x29c   : > { %p4082_p4 = scmp.ge.s32.totalorder %s2762_s27, 2  ;;  %s2272_s9 = scalar_lea.sflag [#allocation5], %s2271_s21 }
 0x29e   : > { %p2627_p5 = pnand %p4082_p4, %p4081_p13 }
 0x2a0   : > { %p2628_p7 = pneg %p2627_p5 }
 0x2a2   : > { %2745 = dma.done.wait (%p2628_p7), %s2272_s9, 4096  }
 0x2a3   : > { %2747 = vsyncadd (%p2628_p7), %s2272_s9, 4294963200  ;;  %p20_p8 = scmp.ge.s32.totalorder %s2836_s30, 4   ;;  %s4083_s24 = smov %s2754_s25 }
 0x2a4   : > { %s4084_s25 = smov %s2758_s26  ;;  %s4085_s26 = smov %s2848_s10 }
 0x2a5   : > { %s4086_s27 = smov %s2836_s30  ;;  %22 = sbr.rel (!%p20_p8) target bundleno = 5 (0x5), region = 96 }
 0x2aa   :  { %2277 = vsyncpa [#allocation4], 1 }
 0x2ab   :  { %2279 = vsyncpa [#allocation4 + $0x1], 1 }
 0x2ac   :  { %2280 = vsyncpa [#allocation5], 1 }
 0x2ad   :  { %2282 = vsyncpa [#allocation5 + $0x1], 1 }

</bundles_post_ra>
